<compile_context>
chip_gen: v5e
topology: v5e:2x2
jax: 0.10.0
libtpu: 0.0.40
codegen_flags: <defaults>
</compile_context>

<pallas_src>
import functools
import math

import jax
import jax.numpy as jnp
from jax.experimental import pallas as pl
from jax.experimental.pallas import tpu as pltpu

F32 = jnp.float32
BF16 = jnp.bfloat16
_VMEM_LIMIT = 32 * 1024 * 1024


# ----------------------------------------------------------------------------
# static (trace-time) helpers
# ----------------------------------------------------------------------------
def _graphs_per_block(num_graphs, nodes_per_graph, max_rows=256):
    """Largest divisor of num_graphs whose packed block stays <= max_rows nodes."""
    best = 1
    for d in range(1, num_graphs + 1):
        if num_graphs % d == 0 and d * nodes_per_graph <= max_rows:
            best = d
    return best


def _readout_chunk(num_graphs, cap=1024):
    """Graphs per readout block (2nd-minor of the [G,C] output block must be 8-aligned
    unless it equals the full dim)."""
    if num_graphs <= cap:
        return num_graphs
    best = num_graphs
    for d in range(8, cap + 1, 8):
        if num_graphs % d == 0:
            best = d
    return best


# ----------------------------------------------------------------------------
# BlockSpec helpers
# ----------------------------------------------------------------------------
def _per_block(tail):
    """Block g of a [GB, *tail] array; leading (grid) axis squeezed."""
    nd = len(tail)
    return pl.BlockSpec((None, *tail), lambda i, _nd=nd: (i,) + (0,) * _nd)


def _shared(shape):
    """Whole-array block (parameters shared by every grid step; fetched once)."""
    nd = len(shape)
    return pl.BlockSpec(tuple(shape), lambda i, _nd=nd: (0,) * _nd)


# ----------------------------------------------------------------------------
# in-kernel building blocks
# ----------------------------------------------------------------------------
def _sage(agg, x, wl, wr, b):
    # SAGEConv (mean aggr): Wl . agg + Wr . x + b   (agg precomputed by caller)
    return (jnp.dot(agg, wl, preferred_element_type=F32)
            + jnp.dot(x, wr, preferred_element_type=F32) + b)


def _graphnorm_elu(x, meanmat, alpha, weight, bias):
    # PyG GraphNorm with per-graph stats done via a block-diagonal averaging matmul
    # (meanmat[i,j] = 1/nodes_per_graph if i,j in same graph), then overflow-safe ELU.
    mean = jnp.dot(meanmat, x, preferred_element_type=F32)
    d = x - alpha * mean
    var = jnp.dot(meanmat, d * d, preferred_element_type=F32)
    y = d * jax.lax.rsqrt(var + 1e-5) * weight + bias
    return jnp.where(y > 0.0, y, jnp.exp(jnp.minimum(y, 0.0)) - 1.0)


def _select_propagate(x, adj, e, ohx, bflat, summat):
    # delta[n] = (adj @ e)[n] @ B_{anat[n]}^T, computed lane-dense as
    #   (ohx * (ae @ [B_0^T|..|B_{A-1}^T])) @ stacked_identity   (two MXU matmuls)
    # TODO(synk): compute_propagation_kernel / propagate_message are not defined in the
    # reference source; assumed W_j = B_k + delta[:, :, None] with per-node mat-vec
    # propagation, rewritten as  out = (x+delta) @ B_{anat}^T + delta * rowsum(x+delta).
    ae = jnp.dot(adj, e, preferred_element_type=F32)
    z = jnp.dot(ae.astype(BF16), bflat, preferred_element_type=F32)           # [R, A*H]
    delta = jnp.dot((ohx * z).astype(BF16), summat, preferred_element_type=F32)
    h = x + delta
    u = jnp.dot(h.astype(BF16), bflat, preferred_element_type=F32)            # [R, A*H]
    bh = jnp.dot((ohx * u).astype(BF16), summat, preferred_element_type=F32)
    return bh + delta * jnp.sum(h, axis=1, keepdims=True)


# ----------------------------------------------------------------------------
# fused stage kernels
# ----------------------------------------------------------------------------
def _stage1_kernel(m1_ref, aw_ref, x_ref, e_ref, ohx_ref,
                   meanmat_ref, bflat_ref, summat_ref, wlr_ref, vec_ref,
                   h_ref, score_ref):
    x = x_ref[...]                                              # [R1, F] bf16
    ohx = ohx_ref[...]                                          # [R1, A*H] bf16
    # --- SAGEConv1 + GraphNorm1 + ELU ----------------------------------------
    agg = jnp.dot(m1_ref[...], x, preferred_element_type=F32).astype(BF16)
    c = _sage(agg, x, wlr_ref[0], wlr_ref[1], vec_ref[0:1, :])
    c = _graphnorm_elu(c, meanmat_ref[...],
                       vec_ref[1:2, :], vec_ref[2:3, :], vec_ref[3:4, :])
    # dropout(p=0.5, training=False) -> identity
    # --- anatomical delta + propagation --------------------------------------
    out = _select_propagate(c, aw_ref[...], e_ref[...], ohx,
                            bflat_ref[...], summat_ref[...])
    h_ref[...] = out
    # --- TopK score epilogue (lane-dense [1, R1] row): tanh(<h, w/||w||>) -----
    wn = vec_ref[4:5, :]                                        # pre-normalised [1, H]
    s = jax.lax.dot_general(wn, out, (((1,), (1,)), ((), ())),
                            preferred_element_type=F32)         # [1, R1]
    score_ref[...] = jnp.tanh(s)


def _stage2_kernel(a2_ref, invdeg_ref, x_ref, e_ref, ohx_ref,
                   meanmat_ref, bflat_ref, summat_ref, wlr_ref, vec_ref,
                   o_ref):
    a2 = a2_ref[...]                                            # [R2, R2] bf16 (binary)
    # --- anatomical delta + propagation on the pooled graph ------------------
    p = _select_propagate(x_ref[...], a2, e_ref[...], ohx_ref[...],
                          bflat_ref[...], summat_ref[...])
    pb = p.astype(BF16)
    # --- SAGEConv2: mean-agg derived in-kernel (m2 = D^-1 a2^T) ---------------
    agg0 = jax.lax.dot_general(a2, pb, (((0,), (0,)), ((), ())),
                               preferred_element_type=F32)       # a2^T @ p
    agg = (agg0 * invdeg_ref[...]).astype(BF16)
    c = _sage(agg, pb, wlr_ref[0], wlr_ref[1], vec_ref[0:1, :])
    # --- GraphNorm2 + ELU ------------------------------------------------------
    o_ref[...] = _graphnorm_elu(c, meanmat_ref[...],
                                vec_ref[1:2, :], vec_ref[2:3, :], vec_ref[3:4, :])


def _readout_kernel(x_ref, w1_ref, b1_ref, w2_ref, b2_ref, o_ref):
    x = x_ref[...]                                              # [Gr, k, H] f32
    s = jnp.sum(x, axis=1)
    mean = s * (1.0 / x.shape[1])
    mx = jnp.max(x, axis=1)
    y = (jnp.dot(mean, w1_ref[0], preferred_element_type=F32)
         + jnp.dot(mx, w1_ref[1], preferred_element_type=F32)
         + jnp.dot(s, w1_ref[2], preferred_element_type=F32)
         + b1_ref[...])
    y = jnp.maximum(y, 0.0)
    y = jnp.dot(y, w2_ref[...], preferred_element_type=F32) + b2_ref[...]
    y = y - jnp.max(y, axis=1, keepdims=True)
    o_ref[...] = y - jnp.log(jnp.sum(jnp.exp(y), axis=1, keepdims=True))


# ----------------------------------------------------------------------------
# pallas_call wrappers
# ----------------------------------------------------------------------------
def stage1(m1, aw, x, e, ohx, meanmat, bflat, summat, wlr, vecs, *, hidden):
    n_blk, r1, feat = x.shape
    ah = ohx.shape[-1]
    return pl.pallas_call(
        _stage1_kernel,
        grid=(n_blk,),
        in_specs=[
            _per_block((r1, r1)),          # mean-aggregation matrix (block-diag, bf16)
            _per_block((r1, r1)),          # weighted adjacency (block-diag, bf16)
            _per_block((r1, feat)),        # node features
            _per_block((r1, hidden)),      # position encodings
            _per_block((r1, ah)),          # expanded anatomical one-hot
            _shared(meanmat.shape),        # GraphNorm averaging matrix (f32)
            _shared(bflat.shape),          # [H, A*H]  stacked B_a^T
            _shared(summat.shape),         # [A*H, H]  stacked identity
            _shared(wlr.shape),            # [2, F, H] SAGE weights
            _shared(vecs.shape),           # [8, H]    stacked bias/norm/pool vectors
        ],
        out_specs=(_per_block((r1, hidden)), _per_block((1, r1))),
        out_shape=(jax.ShapeDtypeStruct((n_blk, r1, hidden), F32),
                   jax.ShapeDtypeStruct((n_blk, 1, r1), F32)),
        compiler_params=pltpu.CompilerParams(
            dimension_semantics=("parallel",),
            vmem_limit_bytes=_VMEM_LIMIT),
    )(m1, aw, x, e, ohx, meanmat, bflat, summat, wlr, vecs)


def stage2(a2, invdeg, x, e, ohx, meanmat, bflat, summat, wlr, vecs, *, hidden):
    n_blk, r2, _ = x.shape
    ah = ohx.shape[-1]
    return pl.pallas_call(
        _stage2_kernel,
        grid=(n_blk,),
        in_specs=[
            _per_block((r2, r2)),          # pooled binary adjacency (block-diag, bf16)
            _per_block((r2, 1)),           # inverse in-degree (f32)
            _per_block((r2, hidden)),      # pooled node activations (f32)
            _per_block((r2, hidden)),      # pooled position encodings
            _per_block((r2, ah)),          # pooled expanded one-hot
            _shared(meanmat.shape),
            _shared(bflat.shape),
            _shared(summat.shape),
            _shared(wlr.shape),            # [2, H, H]
            _shared(vecs.shape),           # [8, H]
        ],
        out_specs=_per_block((r2, hidden)),
        out_shape=jax.ShapeDtypeStruct((n_blk, r2, hidden), F32),
        compiler_params=pltpu.CompilerParams(
            dimension_semantics=("parallel",),
            vmem_limit_bytes=_VMEM_LIMIT),
    )(a2, invdeg, x, e, ohx, meanmat, bflat, summat, wlr, vecs)


def readout(h2, w1, b1, w2, b2):
    g, k, hid = h2.shape
    c = w2.shape[1]
    gr = _readout_chunk(g)
    return pl.pallas_call(
        _readout_kernel,
        grid=(g // gr,),
        in_specs=[
            pl.BlockSpec((gr, k, hid), lambda i: (i, 0, 0)),
            _shared(w1.shape),             # [3, H, H]
            _shared(b1.shape),             # [1, H]
            _shared(w2.shape),             # [H, C]
            _shared(b2.shape),             # [1, C]
        ],
        out_specs=pl.BlockSpec((gr, c), lambda i: (i, 0)),
        out_shape=jax.ShapeDtypeStruct((g, c), F32),
        compiler_params=pltpu.CompilerParams(
            dimension_semantics=("parallel",),
            vmem_limit_bytes=_VMEM_LIMIT),
    )(h2, w1, b1, w2, b2)


# ----------------------------------------------------------------------------
# forward pass (kernels + JAX index glue, all under one jit)
# NOTE: assumes the PyG-style batch has equal-sized graphs with no cross-graph edges.
# ----------------------------------------------------------------------------
@functools.partial(jax.jit,
                   static_argnames=("nodes_per_graph", "num_graphs", "hidden", "num_anat"))
def msmesage_forward(params, x, edge_index, edge_attr, coords, anat, *,
                     nodes_per_graph, num_graphs, hidden, num_anat):
    n, feat = x.shape
    g, npg, hd, a_cls = num_graphs, nodes_per_graph, hidden, num_anat

    gb = _graphs_per_block(g, npg)            # graphs packed per grid step
    n_blk = g // gb
    r1 = gb * npg

    # ---- per-block block-diagonal adjacency (direct scatter, O(G*npg^2)) ---------
    src, dst = edge_index[0], edge_index[1]
    blk = src // r1
    a_w = jnp.zeros((n_blk, r1, r1), F32).at[blk, src % r1, dst % r1].set(edge_attr)
    a_b = jnp.zeros((n_blk, r1, r1), F32).at[blk, src % r1, dst % r1].set(1.0)
    indeg1 = jnp.sum(a_b, axis=1)                                         # per-dst
    m1 = jnp.swapaxes(a_b, 1, 2) / jnp.maximum(indeg1, 1.0)[:, :, None]

    # ---- position encodings (computed once, pooled rows gathered for stage 2) ----
    e = jnp.dot(coords, params["pos_w"]) + params["pos_b"]                # [N, H]

    # ---- expanded anatomical one-hot (lane-dense class select) -------------------
    ohx = jnp.repeat(jax.nn.one_hot(anat, a_cls, dtype=F32), hd, axis=1)  # [N, A*H]

    # ---- shared constant matrices -------------------------------------------------
    bflat_t = params["B_k"].reshape(a_cls * hd, hd).T                     # [H, A*H]
    sum_mat = jnp.tile(jnp.eye(hd, dtype=F32), (a_cls, 1))                # [A*H, H]
    gidx1 = jnp.arange(r1) // npg
    meanmat1 = (gidx1[:, None] == gidx1[None, :]).astype(F32) / npg       # [R1, R1]

    wlr1 = jnp.stack([params["conv1_wl"], params["conv1_wr"]])            # [2, F, H]
    pool_w = params["pool_w"]
    pool_wn = pool_w * jax.lax.rsqrt(jnp.sum(pool_w * pool_w))            # pre-normalised
    vecs1 = jnp.zeros((8, hd), F32)
    vecs1 = vecs1.at[0].set(params["conv1_bl"])
    vecs1 = vecs1.at[1].set(params["norm1_alpha"])
    vecs1 = vecs1.at[2].set(params["norm1_weight"])
    vecs1 = vecs1.at[3].set(params["norm1_bias"])
    vecs1 = vecs1.at[4].set(pool_wn[0])

    h1, score = stage1(
        m1.astype(BF16), a_w.astype(BF16),
        x.reshape(n_blk, r1, feat).astype(BF16),
        e.reshape(n_blk, r1, hd).astype(BF16),
        ohx.reshape(n_blk, r1, a_cls * hd).astype(BF16),
        meanmat1, bflat_t.astype(BF16), sum_mat.astype(BF16),
        wlr1.astype(BF16), vecs1, hidden=hd)

    # ---- TopK pooling (ratio=0.7) per graph — plain-JAX glue ----------------------
    k_keep = math.ceil(0.7 * npg)
    score_g = score.reshape(g, npg)                                       # already tanh'd
    top_scores, idx = jax.lax.top_k(score_g, k_keep)                      # [G, k]
    h1_g = h1.reshape(g, npg, hd)
    x_pool = jnp.take_along_axis(h1_g, idx[:, :, None], axis=1) * top_scores[:, :, None]
    e_pool = jnp.take_along_axis(e.reshape(g, npg, hd), idx[:, :, None], axis=1)
    ohx_pool = jnp.take_along_axis(ohx.reshape(g, npg, a_cls * hd), idx[:, :, None], axis=1)

    # pooled binary adjacency per graph, then packed block-diagonal
    a_b_g = jnp.zeros((g, npg, npg), F32).at[src // npg, src % npg, dst % npg].set(1.0)
    gi = jnp.arange(g)
    a2_g = a_b_g[gi[:, None, None], idx[:, :, None], idx[:, None, :]]     # [G, k, k]
    r2 = gb * k_keep
    a2 = jnp.einsum('gbij,bc->gbicj',
                    a2_g.reshape(n_blk, gb, k_keep, k_keep),
                    jnp.eye(gb, dtype=F32)).reshape(n_blk, r2, r2)
    indeg2 = jnp.sum(a2, axis=1)
    inv_indeg2 = (1.0 / jnp.maximum(indeg2, 1.0))[:, :, None]             # [GB, R2, 1]
    gidx2 = jnp.arange(r2) // k_keep
    meanmat2 = (gidx2[:, None] == gidx2[None, :]).astype(F32) / k_keep

    wlr2 = jnp.stack([params["conv2_wl"], params["conv2_wr"]])            # [2, H, H]
    vecs2 = jnp.zeros((8, hd), F32)
    vecs2 = vecs2.at[0].set(params["conv2_bl"])
    vecs2 = vecs2.at[1].set(params["norm2_alpha"])
    vecs2 = vecs2.at[2].set(params["norm2_weight"])
    vecs2 = vecs2.at[3].set(params["norm2_bias"])

    h2 = stage2(
        a2.astype(BF16), inv_indeg2,
        x_pool.reshape(n_blk, r2, hd),
        e_pool.reshape(n_blk, r2, hd).astype(BF16),
        ohx_pool.reshape(n_blk, r2, a_cls * hd).astype(BF16),
        meanmat2, bflat_t.astype(BF16), sum_mat.astype(BF16),
        wlr2.astype(BF16), vecs2, hidden=hd)

    return readout(h2.reshape(g, k_keep, hd),
                   params["lin1_w"].reshape(3, hd, hd),
                   params["lin1_b"].reshape(1, hd),
                   params["lin2_w"], params["lin2_b"].reshape(1, -1))


# ----------------------------------------------------------------------------
# deterministic parameter init (shapes from MSMESAGE.__init__)
# ----------------------------------------------------------------------------
def init_params(key, num_features, hidden, num_classes, num_anat):
    keys = jax.random.split(key, 10)

    def lin_init(k, fan_in, fan_out):
        kw, kb = jax.random.split(k)
        bound = 1.0 / math.sqrt(fan_in)
        w = jax.random.uniform(kw, (fan_in, fan_out), F32, -bound, bound)
        b = jax.random.uniform(kb, (fan_out,), F32, -bound, bound)
        return w, b

    p = {}
    p["conv1_wl"], p["conv1_bl"] = lin_init(keys[0], num_features, hidden)
    p["conv1_wr"], _ = lin_init(keys[1], num_features, hidden)      # root lin (no bias)
    p["conv2_wl"], p["conv2_bl"] = lin_init(keys[2], hidden, hidden)
    p["conv2_wr"], _ = lin_init(keys[3], hidden, hidden)
    p["B_k"] = 0.1 * jax.random.normal(keys[4], (num_anat, hidden * hidden), F32)
    p["pos_w"], p["pos_b"] = lin_init(keys[5], 3, hidden)
    p["pool_w"] = jax.random.normal(keys[6], (1, hidden), F32)
    p["lin1_w"], p["lin1_b"] = lin_init(keys[7], 3 * hidden, hidden)
    p["lin2_w"], p["lin2_b"] = lin_init(keys[8], hidden, num_classes)
    for name in ("norm1", "norm2"):
        p[name + "_alpha"] = jnp.ones((hidden,), F32)
        p[name + "_weight"] = jnp.ones((hidden,), F32)
        p[name + "_bias"] = jnp.zeros((hidden,), F32)
    return p


# ----------------------------------------------------------------------------
if __name__ == "__main__":
    NUM_GRAPHS = 2
    NODES_PER_GRAPH = 16
    N = NUM_GRAPHS * NODES_PER_GRAPH
    NUM_FEATURES = 16
    HIDDEN = 32
    NUM_CLASSES = 4
    NUM_ANAT = 6

    key = jax.random.PRNGKey(0)
    k1, k2, k3, k4 = jax.random.split(key, 4)
    x = jax.random.normal(k1, (N, NUM_FEATURES), F32)
    coords = jax.random.normal(k2, (N, 3), F32)
    anat = jax.random.randint(k3, (N,), 0, NUM_ANAT)

    # deterministic directed edges within each graph (ring + skip-3)
    srcs, dsts = [], []
    for gidx in range(NUM_GRAPHS):
        base = gidx * NODES_PER_GRAPH
        for i in range(NODES_PER_GRAPH):
            srcs += [base + i, base + (i + 1) % NODES_PER_GRAPH, base + i]
            dsts += [base + (i + 1) % NODES_PER_GRAPH, base + i,
                     base + (i + 3) % NODES_PER_GRAPH]
    edge_index = jnp.array([srcs, dsts], dtype=jnp.int32)
    edge_attr = jax.random.uniform(k4, (edge_index.shape[1],), F32, 0.1, 1.0)

    params = init_params(jax.random.PRNGKey(42), NUM_FEATURES, HIDDEN, NUM_CLASSES, NUM_ANAT)

    out = msmesage_forward(params, x, edge_index, edge_attr, coords, anat,
                           nodes_per_graph=NODES_PER_GRAPH, num_graphs=NUM_GRAPHS,
                           hidden=HIDDEN, num_anat=NUM_ANAT)
    out = jax.block_until_ready(out)

    assert out.shape == (NUM_GRAPHS, NUM_CLASSES)
    assert bool(jnp.all(jnp.isfinite(out)))
    # rows of log_softmax must exp-sum to 1
    assert bool(jnp.allclose(jnp.sum(jnp.exp(out), axis=1), 1.0, atol=1e-3))
    print("KERNEL_OK")
</pallas_src>

<mosaic_0001>
module attributes {stable_mosaic.version = 11 : i64} {
  func.func @_stage1_kernel(%arg0: i32, %arg1: memref<1x32x32xbf16, #tpu.memory_space<vmem>>, %arg2: memref<1x32x32xbf16, #tpu.memory_space<vmem>>, %arg3: memref<1x32x16xbf16, #tpu.memory_space<vmem>>, %arg4: memref<1x32x32xbf16, #tpu.memory_space<vmem>>, %arg5: memref<1x32x192xbf16, #tpu.memory_space<vmem>>, %arg6: memref<32x32xf32, #tpu.memory_space<vmem>>, %arg7: memref<32x192xbf16, #tpu.memory_space<vmem>>, %arg8: memref<192x32xbf16, #tpu.memory_space<vmem>>, %arg9: memref<2x16x32xbf16, #tpu.memory_space<vmem>>, %arg10: memref<8x32xf32, #tpu.memory_space<vmem>>, %arg11: memref<1x32x32xf32, #tpu.memory_space<vmem>>, %arg12: memref<1x1x32xf32, #tpu.memory_space<vmem>>) attributes {dimension_semantics = [#tpu.dimension_semantics<parallel>], iteration_bounds = array<i64: 1>, scalar_prefetch = 0 : i64, scratch_operands = 0 : i64, tpu.core_type = #tpu.core_type<tc>, window_params = [{transform_indices = @transform_0, window_bounds = array<i64: 1, 32, 32>}, {transform_indices = @transform_1, window_bounds = array<i64: 1, 32, 32>}, {transform_indices = @transform_2, window_bounds = array<i64: 1, 32, 16>}, {transform_indices = @transform_3, window_bounds = array<i64: 1, 32, 32>}, {transform_indices = @transform_4, window_bounds = array<i64: 1, 32, 192>}, {pipeline_mode = #tpu.pipeline_mode<synchronous>, transform_indices = @transform_5, window_bounds = array<i64: 32, 32>}, {pipeline_mode = #tpu.pipeline_mode<synchronous>, transform_indices = @transform_6, window_bounds = array<i64: 32, 192>}, {pipeline_mode = #tpu.pipeline_mode<synchronous>, transform_indices = @transform_7, window_bounds = array<i64: 192, 32>}, {pipeline_mode = #tpu.pipeline_mode<synchronous>, transform_indices = @transform_8, window_bounds = array<i64: 2, 16, 32>}, {pipeline_mode = #tpu.pipeline_mode<synchronous>, transform_indices = @transform_9, window_bounds = array<i64: 8, 32>}, {transform_indices = @transform_10, window_bounds = array<i64: 1, 32, 32>}, {transform_indices = @transform_11, window_bounds = array<i64: 1, 1, 32>}]} {
    %c0 = arith.constant 0 : index
    %c0_0 = arith.constant 0 : index
    %c0_1 = arith.constant 0 : index
    %0 = vector.load %arg3[%c0, %c0_0, %c0_1] : memref<1x32x16xbf16, #tpu.memory_space<vmem>>, vector<1x32x16xbf16>
    %1 = vector.shape_cast %0 : vector<1x32x16xbf16> to vector<32x16xbf16>
    %c0_2 = arith.constant 0 : index
    %c0_3 = arith.constant 0 : index
    %c0_4 = arith.constant 0 : index
    %2 = vector.load %arg5[%c0_2, %c0_3, %c0_4] : memref<1x32x192xbf16, #tpu.memory_space<vmem>>, vector<1x32x192xbf16>
    %3 = vector.shape_cast %2 : vector<1x32x192xbf16> to vector<32x192xbf16>
    %c0_5 = arith.constant 0 : index
    %c0_6 = arith.constant 0 : index
    %c0_7 = arith.constant 0 : index
    %4 = vector.load %arg1[%c0_5, %c0_6, %c0_7] : memref<1x32x32xbf16, #tpu.memory_space<vmem>>, vector<1x32x32xbf16>
    %5 = vector.shape_cast %4 : vector<1x32x32xbf16> to vector<32x32xbf16>
    %cst = arith.constant dense<0.000000e+00> : vector<32x16xf32>
    %6 = tpu.matmul %5, %1, %cst {dimension_numbers = #tpu.dot_dimension_numbers<[1], [0], [0], [1], [0, 0, 1, 1], [], []>} : vector<32x32xbf16>, vector<32x16xbf16>, vector<32x16xf32> -> vector<32x16xf32>
    %7 = arith.truncf %6 : vector<32x16xf32> to vector<32x16xbf16>
    %c0_8 = arith.constant 0 : index
    %c0_9 = arith.constant 0 : index
    %c0_10 = arith.constant 0 : index
    %8 = vector.load %arg9[%c0_8, %c0_9, %c0_10] : memref<2x16x32xbf16, #tpu.memory_space<vmem>>, vector<1x16x32xbf16>
    %9 = vector.shape_cast %8 : vector<1x16x32xbf16> to vector<16x32xbf16>
    %c1 = arith.constant 1 : index
    %c0_11 = arith.constant 0 : index
    %c0_12 = arith.constant 0 : index
    %10 = vector.load %arg9[%c1, %c0_11, %c0_12] : memref<2x16x32xbf16, #tpu.memory_space<vmem>>, vector<1x16x32xbf16>
    %11 = vector.shape_cast %10 : vector<1x16x32xbf16> to vector<16x32xbf16>
    %c0_13 = arith.constant 0 : index
    %c0_14 = arith.constant 0 : index
    %12 = vector.load %arg10[%c0_13, %c0_14] : memref<8x32xf32, #tpu.memory_space<vmem>>, vector<1x32xf32>
    %cst_15 = arith.constant dense<0.000000e+00> : vector<32x32xf32>
    %13 = tpu.matmul %7, %9, %cst_15 {dimension_numbers = #tpu.dot_dimension_numbers<[1], [0], [0], [1], [0, 0, 1, 1], [], []>} : vector<32x16xbf16>, vector<16x32xbf16>, vector<32x32xf32> -> vector<32x32xf32>
    %cst_16 = arith.constant dense<0.000000e+00> : vector<32x32xf32>
    %14 = tpu.matmul %1, %11, %cst_16 {dimension_numbers = #tpu.dot_dimension_numbers<[1], [0], [0], [1], [0, 0, 1, 1], [], []>} : vector<32x16xbf16>, vector<16x32xbf16>, vector<32x32xf32> -> vector<32x32xf32>
    %15 = arith.addf %13, %14 : vector<32x32xf32>
    %16 = vector.broadcast %12 : vector<1x32xf32> to vector<32x32xf32>
    %17 = arith.addf %15, %16 : vector<32x32xf32>
    %c0_17 = arith.constant 0 : index
    %c0_18 = arith.constant 0 : index
    %18 = vector.load %arg6[%c0_17, %c0_18] : memref<32x32xf32, #tpu.memory_space<vmem>>, vector<32x32xf32>
    %c1_19 = arith.constant 1 : index
    %c0_20 = arith.constant 0 : index
    %19 = vector.load %arg10[%c1_19, %c0_20] : memref<8x32xf32, #tpu.memory_space<vmem>>, vector<1x32xf32>
    %c2 = arith.constant 2 : index
    %c0_21 = arith.constant 0 : index
    %20 = vector.load %arg10[%c2, %c0_21] : memref<8x32xf32, #tpu.memory_space<vmem>>, vector<1x32xf32>
    %c3 = arith.constant 3 : index
    %c0_22 = arith.constant 0 : index
    %21 = vector.load %arg10[%c3, %c0_22] : memref<8x32xf32, #tpu.memory_space<vmem>>, vector<1x32xf32>
    %cst_23 = arith.constant dense<0.000000e+00> : vector<32x32xf32>
    %22 = tpu.matmul %18, %17, %cst_23 {dimension_numbers = #tpu.dot_dimension_numbers<[1], [0], [0], [1], [0, 0, 1, 1], [], []>} : vector<32x32xf32>, vector<32x32xf32>, vector<32x32xf32> -> vector<32x32xf32>
    %23 = vector.broadcast %19 : vector<1x32xf32> to vector<32x32xf32>
    %24 = arith.mulf %23, %22 : vector<32x32xf32>
    %25 = arith.subf %17, %24 : vector<32x32xf32>
    %26 = arith.mulf %25, %25 : vector<32x32xf32>
    %cst_24 = arith.constant dense<0.000000e+00> : vector<32x32xf32>
    %27 = tpu.matmul %18, %26, %cst_24 {dimension_numbers = #tpu.dot_dimension_numbers<[1], [0], [0], [1], [0, 0, 1, 1], [], []>} : vector<32x32xf32>, vector<32x32xf32>, vector<32x32xf32> -> vector<32x32xf32>
    %cst_25 = arith.constant 9.99999974E-6 : f32
    %28 = vector.broadcast %cst_25 : f32 to vector<32x32xf32>
    %29 = arith.addf %27, %28 : vector<32x32xf32>
    %30 = math.rsqrt %29 : vector<32x32xf32>
    %31 = arith.mulf %25, %30 : vector<32x32xf32>
    %32 = vector.broadcast %20 : vector<1x32xf32> to vector<32x32xf32>
    %33 = arith.mulf %31, %32 : vector<32x32xf32>
    %34 = vector.broadcast %21 : vector<1x32xf32> to vector<32x32xf32>
    %35 = arith.addf %33, %34 : vector<32x32xf32>
    %cst_26 = arith.constant 0.000000e+00 : f32
    %36 = vector.broadcast %cst_26 : f32 to vector<32x32xf32>
    %37 = arith.cmpf ogt, %35, %36 : vector<32x32xf32>
    %cst_27 = arith.constant 0.000000e+00 : f32
    %38 = vector.broadcast %cst_27 : f32 to vector<32x32xf32>
    %39 = arith.minimumf %35, %38 : vector<32x32xf32>
    %40 = math.exp %39 : vector<32x32xf32>
    %cst_28 = arith.constant 1.000000e+00 : f32
    %41 = vector.broadcast %cst_28 : f32 to vector<32x32xf32>
    %42 = arith.subf %40, %41 : vector<32x32xf32>
    %43 = arith.select %37, %35, %42 : vector<32x32xi1>, vector<32x32xf32>
    %c0_29 = arith.constant 0 : index
    %c0_30 = arith.constant 0 : index
    %c0_31 = arith.constant 0 : index
    %44 = vector.load %arg2[%c0_29, %c0_30, %c0_31] : memref<1x32x32xbf16, #tpu.memory_space<vmem>>, vector<1x32x32xbf16>
    %45 = vector.shape_cast %44 : vector<1x32x32xbf16> to vector<32x32xbf16>
    %c0_32 = arith.constant 0 : index
    %c0_33 = arith.constant 0 : index
    %c0_34 = arith.constant 0 : index
    %46 = vector.load %arg4[%c0_32, %c0_33, %c0_34] : memref<1x32x32xbf16, #tpu.memory_space<vmem>>, vector<1x32x32xbf16>
    %47 = vector.shape_cast %46 : vector<1x32x32xbf16> to vector<32x32xbf16>
    %c0_35 = arith.constant 0 : index
    %c0_36 = arith.constant 0 : index
    %48 = vector.load %arg7[%c0_35, %c0_36] : memref<32x192xbf16, #tpu.memory_space<vmem>>, vector<32x192xbf16>
    %c0_37 = arith.constant 0 : index
    %c0_38 = arith.constant 0 : index
    %49 = vector.load %arg8[%c0_37, %c0_38] : memref<192x32xbf16, #tpu.memory_space<vmem>>, vector<192x32xbf16>
    %cst_39 = arith.constant dense<0.000000e+00> : vector<32x32xf32>
    %50 = tpu.matmul %45, %47, %cst_39 {dimension_numbers = #tpu.dot_dimension_numbers<[1], [0], [0], [1], [0, 0, 1, 1], [], []>} : vector<32x32xbf16>, vector<32x32xbf16>, vector<32x32xf32> -> vector<32x32xf32>
    %51 = arith.truncf %50 : vector<32x32xf32> to vector<32x32xbf16>
    %cst_40 = arith.constant dense<0.000000e+00> : vector<32x192xf32>
    %52 = tpu.matmul %51, %48, %cst_40 {dimension_numbers = #tpu.dot_dimension_numbers<[1], [0], [0], [1], [0, 0, 1, 1], [], []>} : vector<32x32xbf16>, vector<32x192xbf16>, vector<32x192xf32> -> vector<32x192xf32>
    %53 = arith.extf %3 : vector<32x192xbf16> to vector<32x192xf32>
    %54 = arith.mulf %53, %52 : vector<32x192xf32>
    %55 = arith.truncf %54 : vector<32x192xf32> to vector<32x192xbf16>
    %cst_41 = arith.constant dense<0.000000e+00> : vector<32x32xf32>
    %56 = tpu.matmul %55, %49, %cst_41 {dimension_numbers = #tpu.dot_dimension_numbers<[1], [0], [0], [1], [0, 0, 1, 1], [], []>} : vector<32x192xbf16>, vector<192x32xbf16>, vector<32x32xf32> -> vector<32x32xf32>
    %57 = arith.addf %43, %56 : vector<32x32xf32>
    %58 = arith.truncf %57 : vector<32x32xf32> to vector<32x32xbf16>
    %cst_42 = arith.constant dense<0.000000e+00> : vector<32x192xf32>
    %59 = tpu.matmul %58, %48, %cst_42 {dimension_numbers = #tpu.dot_dimension_numbers<[1], [0], [0], [1], [0, 0, 1, 1], [], []>} : vector<32x32xbf16>, vector<32x192xbf16>, vector<32x192xf32> -> vector<32x192xf32>
    %60 = arith.extf %3 : vector<32x192xbf16> to vector<32x192xf32>
    %61 = arith.mulf %60, %59 : vector<32x192xf32>
    %62 = arith.truncf %61 : vector<32x192xf32> to vector<32x192xbf16>
    %cst_43 = arith.constant dense<0.000000e+00> : vector<32x32xf32>
    %63 = tpu.matmul %62, %49, %cst_43 {dimension_numbers = #tpu.dot_dimension_numbers<[1], [0], [0], [1], [0, 0, 1, 1], [], []>} : vector<32x192xbf16>, vector<192x32xbf16>, vector<32x32xf32> -> vector<32x32xf32>
    %cst_44 = arith.constant dense<0.000000e+00> : vector<32xf32>
    %64 = vector.multi_reduction <add>, %57, %cst_44 [1] : vector<32x32xf32> to vector<32xf32>
    %65 = vector.shape_cast %64 : vector<32xf32> to vector<32x1xf32>
    %66 = vector.broadcast %65 : vector<32x1xf32> to vector<32x32xf32>
    %67 = arith.mulf %56, %66 : vector<32x32xf32>
    %68 = arith.addf %63, %67 : vector<32x32xf32>
    %c0_45 = arith.constant 0 : index
    %c0_46 = arith.constant 0 : index
    %c0_47 = arith.constant 0 : index
    %69 = vector.load %arg11[%c0_45, %c0_46, %c0_47] : memref<1x32x32xf32, #tpu.memory_space<vmem>>, vector<1x32x32xf32>
    %70 = vector.shape_cast %69 : vector<1x32x32xf32> to vector<32x32xf32>
    %71 = vector.shape_cast %68 : vector<32x32xf32> to vector<1x32x32xf32>
    tpu.vector_store %arg11[%c0_45, %c0_46, %c0_47], %71 {strides = array<i32>} : memref<1x32x32xf32, #tpu.memory_space<vmem>>, vector<1x32x32xf32>,
    %c4 = arith.constant 4 : index
    %c0_48 = arith.constant 0 : index
    %72 = vector.load %arg10[%c4, %c0_48] : memref<8x32xf32, #tpu.memory_space<vmem>>, vector<1x32xf32>
    %cst_49 = arith.constant dense<0.000000e+00> : vector<1x32xf32>
    %73 = tpu.matmul %72, %68, %cst_49 {dimension_numbers = #tpu.dot_dimension_numbers<[1], [1], [0], [0], [0, 0, 1, 0], [], []>} : vector<1x32xf32>, vector<32x32xf32>, vector<1x32xf32> -> vector<1x32xf32>
    %74 = math.tanh %73 : vector<1x32xf32>
    %c0_50 = arith.constant 0 : index
    %c0_51 = arith.constant 0 : index
    %c0_52 = arith.constant 0 : index
    %75 = vector.load %arg12[%c0_50, %c0_51, %c0_52] : memref<1x1x32xf32, #tpu.memory_space<vmem>>, vector<1x1x32xf32>
    %76 = vector.shape_cast %75 : vector<1x1x32xf32> to vector<1x32xf32>
    %77 = vector.shape_cast %74 : vector<1x32xf32> to vector<1x1x32xf32>
    tpu.vector_store %arg12[%c0_50, %c0_51, %c0_52], %77 {strides = array<i32>} : memref<1x1x32xf32, #tpu.memory_space<vmem>>, vector<1x1x32xf32>,
    return
  }
  func.func @transform_0(%arg0: i32) -> (i32, i32, i32) {
    %c0_i32 = arith.constant 0 : i32
    %c0_i32_0 = arith.constant 0 : i32
    %c0_i32_1 = arith.constant 0 : i32
    return %arg0, %c0_i32, %c0_i32_0 : i32, i32, i32
  }
  func.func @transform_1(%arg0: i32) -> (i32, i32, i32) {
    %c0_i32 = arith.constant 0 : i32
    %c0_i32_0 = arith.constant 0 : i32
    %c0_i32_1 = arith.constant 0 : i32
    return %arg0, %c0_i32, %c0_i32_0 : i32, i32, i32
  }
  func.func @transform_2(%arg0: i32) -> (i32, i32, i32) {
    %c0_i32 = arith.constant 0 : i32
    %c0_i32_0 = arith.constant 0 : i32
    %c0_i32_1 = arith.constant 0 : i32
    return %arg0, %c0_i32, %c0_i32_0 : i32, i32, i32
  }
  func.func @transform_3(%arg0: i32) -> (i32, i32, i32) {
    %c0_i32 = arith.constant 0 : i32
    %c0_i32_0 = arith.constant 0 : i32
    %c0_i32_1 = arith.constant 0 : i32
    return %arg0, %c0_i32, %c0_i32_0 : i32, i32, i32
  }
  func.func @transform_4(%arg0: i32) -> (i32, i32, i32) {
    %c0_i32 = arith.constant 0 : i32
    %c0_i32_0 = arith.constant 0 : i32
    %c0_i32_1 = arith.constant 0 : i32
    return %arg0, %c0_i32, %c0_i32_0 : i32, i32, i32
  }
  func.func @transform_5(%arg0: i32) -> (i32, i32) {
    %c0_i32 = arith.constant 0 : i32
    %c0_i32_0 = arith.constant 0 : i32
    %c0_i32_1 = arith.constant 0 : i32
    return %c0_i32, %c0_i32_0 : i32, i32
  }
  func.func @transform_6(%arg0: i32) -> (i32, i32) {
    %c0_i32 = arith.constant 0 : i32
    %c0_i32_0 = arith.constant 0 : i32
    %c0_i32_1 = arith.constant 0 : i32
    return %c0_i32, %c0_i32_0 : i32, i32
  }
  func.func @transform_7(%arg0: i32) -> (i32, i32) {
    %c0_i32 = arith.constant 0 : i32
    %c0_i32_0 = arith.constant 0 : i32
    %c0_i32_1 = arith.constant 0 : i32
    return %c0_i32, %c0_i32_0 : i32, i32
  }
  func.func @transform_8(%arg0: i32) -> (i32, i32, i32) {
    %c0_i32 = arith.constant 0 : i32
    %c0_i32_0 = arith.constant 0 : i32
    %c0_i32_1 = arith.constant 0 : i32
    %c0_i32_2 = arith.constant 0 : i32
    return %c0_i32, %c0_i32_0, %c0_i32_1 : i32, i32, i32
  }
  func.func @transform_9(%arg0: i32) -> (i32, i32) {
    %c0_i32 = arith.constant 0 : i32
    %c0_i32_0 = arith.constant 0 : i32
    %c0_i32_1 = arith.constant 0 : i32
    return %c0_i32, %c0_i32_0 : i32, i32
  }
  func.func @transform_10(%arg0: i32) -> (i32, i32, i32) {
    %c0_i32 = arith.constant 0 : i32
    %c0_i32_0 = arith.constant 0 : i32
    %c0_i32_1 = arith.constant 0 : i32
    return %arg0, %c0_i32, %c0_i32_0 : i32, i32, i32
  }
  func.func @transform_11(%arg0: i32) -> (i32, i32, i32) {
    %c0_i32 = arith.constant 0 : i32
    %c0_i32_0 = arith.constant 0 : i32
    %c0_i32_1 = arith.constant 0 : i32
    return %arg0, %c0_i32, %c0_i32_0 : i32, i32, i32
  }
}

module attributes {stable_mosaic.version = 11 : i64} {
  func.func @_stage2_kernel(%arg0: i32, %arg1: memref<1x24x24xbf16, #tpu.memory_space<vmem>>, %arg2: memref<1x24x1xf32, #tpu.memory_space<vmem>>, %arg3: memref<1x24x32xf32, #tpu.memory_space<vmem>>, %arg4: memref<1x24x32xbf16, #tpu.memory_space<vmem>>, %arg5: memref<1x24x192xbf16, #tpu.memory_space<vmem>>, %arg6: memref<24x24xf32, #tpu.memory_space<vmem>>, %arg7: memref<32x192xbf16, #tpu.memory_space<vmem>>, %arg8: memref<192x32xbf16, #tpu.memory_space<vmem>>, %arg9: memref<2x32x32xbf16, #tpu.memory_space<vmem>>, %arg10: memref<8x32xf32, #tpu.memory_space<vmem>>, %arg11: memref<1x24x32xf32, #tpu.memory_space<vmem>>) attributes {dimension_semantics = [#tpu.dimension_semantics<parallel>], iteration_bounds = array<i64: 1>, scalar_prefetch = 0 : i64, scratch_operands = 0 : i64, tpu.core_type = #tpu.core_type<tc>, window_params = [{transform_indices = @transform_0, window_bounds = array<i64: 1, 24, 24>}, {transform_indices = @transform_1, window_bounds = array<i64: 1, 24, 1>}, {transform_indices = @transform_2, window_bounds = array<i64: 1, 24, 32>}, {transform_indices = @transform_3, window_bounds = array<i64: 1, 24, 32>}, {transform_indices = @transform_4, window_bounds = array<i64: 1, 24, 192>}, {pipeline_mode = #tpu.pipeline_mode<synchronous>, transform_indices = @transform_5, window_bounds = array<i64: 24, 24>}, {pipeline_mode = #tpu.pipeline_mode<synchronous>, transform_indices = @transform_6, window_bounds = array<i64: 32, 192>}, {pipeline_mode = #tpu.pipeline_mode<synchronous>, transform_indices = @transform_7, window_bounds = array<i64: 192, 32>}, {pipeline_mode = #tpu.pipeline_mode<synchronous>, transform_indices = @transform_8, window_bounds = array<i64: 2, 32, 32>}, {pipeline_mode = #tpu.pipeline_mode<synchronous>, transform_indices = @transform_9, window_bounds = array<i64: 8, 32>}, {transform_indices = @transform_10, window_bounds = array<i64: 1, 24, 32>}]} {
    %c0 = arith.constant 0 : index
    %c0_0 = arith.constant 0 : index
    %c0_1 = arith.constant 0 : index
    %0 = vector.load %arg1[%c0, %c0_0, %c0_1] : memref<1x24x24xbf16, #tpu.memory_space<vmem>>, vector<1x24x24xbf16>
    %1 = vector.shape_cast %0 : vector<1x24x24xbf16> to vector<24x24xbf16>
    %c0_2 = arith.constant 0 : index
    %c0_3 = arith.constant 0 : index
    %c0_4 = arith.constant 0 : index
    %2 = vector.load %arg3[%c0_2, %c0_3, %c0_4] : memref<1x24x32xf32, #tpu.memory_space<vmem>>, vector<1x24x32xf32>
    %3 = vector.shape_cast %2 : vector<1x24x32xf32> to vector<24x32xf32>
    %c0_5 = arith.constant 0 : index
    %c0_6 = arith.constant 0 : index
    %c0_7 = arith.constant 0 : index
    %4 = vector.load %arg4[%c0_5, %c0_6, %c0_7] : memref<1x24x32xbf16, #tpu.memory_space<vmem>>, vector<1x24x32xbf16>
    %5 = vector.shape_cast %4 : vector<1x24x32xbf16> to vector<24x32xbf16>
    %c0_8 = arith.constant 0 : index
    %c0_9 = arith.constant 0 : index
    %c0_10 = arith.constant 0 : index
    %6 = vector.load %arg5[%c0_8, %c0_9, %c0_10] : memref<1x24x192xbf16, #tpu.memory_space<vmem>>, vector<1x24x192xbf16>
    %7 = vector.shape_cast %6 : vector<1x24x192xbf16> to vector<24x192xbf16>
    %c0_11 = arith.constant 0 : index
    %c0_12 = arith.constant 0 : index
    %8 = vector.load %arg7[%c0_11, %c0_12] : memref<32x192xbf16, #tpu.memory_space<vmem>>, vector<32x192xbf16>
    %c0_13 = arith.constant 0 : index
    %c0_14 = arith.constant 0 : index
    %9 = vector.load %arg8[%c0_13, %c0_14] : memref<192x32xbf16, #tpu.memory_space<vmem>>, vector<192x32xbf16>
    %cst = arith.constant dense<0.000000e+00> : vector<24x32xf32>
    %10 = tpu.matmul %1, %5, %cst {dimension_numbers = #tpu.dot_dimension_numbers<[1], [0], [0], [1], [0, 0, 1, 1], [], []>} : vector<24x24xbf16>, vector<24x32xbf16>, vector<24x32xf32> -> vector<24x32xf32>
    %11 = arith.truncf %10 : vector<24x32xf32> to vector<24x32xbf16>
    %cst_15 = arith.constant dense<0.000000e+00> : vector<24x192xf32>
    %12 = tpu.matmul %11, %8, %cst_15 {dimension_numbers = #tpu.dot_dimension_numbers<[1], [0], [0], [1], [0, 0, 1, 1], [], []>} : vector<24x32xbf16>, vector<32x192xbf16>, vector<24x192xf32> -> vector<24x192xf32>
    %13 = arith.extf %7 : vector<24x192xbf16> to vector<24x192xf32>
    %14 = arith.mulf %13, %12 : vector<24x192xf32>
    %15 = arith.truncf %14 : vector<24x192xf32> to vector<24x192xbf16>
    %cst_16 = arith.constant dense<0.000000e+00> : vector<24x32xf32>
    %16 = tpu.matmul %15, %9, %cst_16 {dimension_numbers = #tpu.dot_dimension_numbers<[1], [0], [0], [1], [0, 0, 1, 1], [], []>} : vector<24x192xbf16>, vector<192x32xbf16>, vector<24x32xf32> -> vector<24x32xf32>
    %17 = arith.addf %3, %16 : vector<24x32xf32>
    %18 = arith.truncf %17 : vector<24x32xf32> to vector<24x32xbf16>
    %cst_17 = arith.constant dense<0.000000e+00> : vector<24x192xf32>
    %19 = tpu.matmul %18, %8, %cst_17 {dimension_numbers = #tpu.dot_dimension_numbers<[1], [0], [0], [1], [0, 0, 1, 1], [], []>} : vector<24x32xbf16>, vector<32x192xbf16>, vector<24x192xf32> -> vector<24x192xf32>
    %20 = arith.extf %7 : vector<24x192xbf16> to vector<24x192xf32>
    %21 = arith.mulf %20, %19 : vector<24x192xf32>
    %22 = arith.truncf %21 : vector<24x192xf32> to vector<24x192xbf16>
    %cst_18 = arith.constant dense<0.000000e+00> : vector<24x32xf32>
    %23 = tpu.matmul %22, %9, %cst_18 {dimension_numbers = #tpu.dot_dimension_numbers<[1], [0], [0], [1], [0, 0, 1, 1], [], []>} : vector<24x192xbf16>, vector<192x32xbf16>, vector<24x32xf32> -> vector<24x32xf32>
    %cst_19 = arith.constant dense<0.000000e+00> : vector<24xf32>
    %24 = vector.multi_reduction <add>, %17, %cst_19 [1] : vector<24x32xf32> to vector<24xf32>
    %25 = vector.shape_cast %24 : vector<24xf32> to vector<24x1xf32>
    %26 = vector.broadcast %25 : vector<24x1xf32> to vector<24x32xf32>
    %27 = arith.mulf %16, %26 : vector<24x32xf32>
    %28 = arith.addf %23, %27 : vector<24x32xf32>
    %29 = arith.truncf %28 : vector<24x32xf32> to vector<24x32xbf16>
    %cst_20 = arith.constant dense<0.000000e+00> : vector<24x32xf32>
    %30 = tpu.matmul %1, %29, %cst_20 {dimension_numbers = #tpu.dot_dimension_numbers<[0], [0], [1], [1], [0, 1, 1, 1], [], []>} : vector<24x24xbf16>, vector<24x32xbf16>, vector<24x32xf32> -> vector<24x32xf32>
    %c0_21 = arith.constant 0 : index
    %c0_22 = arith.constant 0 : index
    %c0_23 = arith.constant 0 : index
    %31 = vector.load %arg2[%c0_21, %c0_22, %c0_23] : memref<1x24x1xf32, #tpu.memory_space<vmem>>, vector<1x24x1xf32>
    %32 = vector.shape_cast %31 : vector<1x24x1xf32> to vector<24x1xf32>
    %33 = vector.broadcast %32 : vector<24x1xf32> to vector<24x32xf32>
    %34 = arith.mulf %30, %33 : vector<24x32xf32>
    %35 = arith.truncf %34 : vector<24x32xf32> to vector<24x32xbf16>
    %c0_24 = arith.constant 0 : index
    %c0_25 = arith.constant 0 : index
    %c0_26 = arith.constant 0 : index
    %36 = vector.load %arg9[%c0_24, %c0_25, %c0_26] : memref<2x32x32xbf16, #tpu.memory_space<vmem>>, vector<1x32x32xbf16>
    %37 = vector.shape_cast %36 : vector<1x32x32xbf16> to vector<32x32xbf16>
    %c1 = arith.constant 1 : index
    %c0_27 = arith.constant 0 : index
    %c0_28 = arith.constant 0 : index
    %38 = vector.load %arg9[%c1, %c0_27, %c0_28] : memref<2x32x32xbf16, #tpu.memory_space<vmem>>, vector<1x32x32xbf16>
    %39 = vector.shape_cast %38 : vector<1x32x32xbf16> to vector<32x32xbf16>
    %c0_29 = arith.constant 0 : index
    %c0_30 = arith.constant 0 : index
    %40 = vector.load %arg10[%c0_29, %c0_30] : memref<8x32xf32, #tpu.memory_space<vmem>>, vector<1x32xf32>
    %cst_31 = arith.constant dense<0.000000e+00> : vector<24x32xf32>
    %41 = tpu.matmul %35, %37, %cst_31 {dimension_numbers = #tpu.dot_dimension_numbers<[1], [0], [0], [1], [0, 0, 1, 1], [], []>} : vector<24x32xbf16>, vector<32x32xbf16>, vector<24x32xf32> -> vector<24x32xf32>
    %cst_32 = arith.constant dense<0.000000e+00> : vector<24x32xf32>
    %42 = tpu.matmul %29, %39, %cst_32 {dimension_numbers = #tpu.dot_dimension_numbers<[1], [0], [0], [1], [0, 0, 1, 1], [], []>} : vector<24x32xbf16>, vector<32x32xbf16>, vector<24x32xf32> -> vector<24x32xf32>
    %43 = arith.addf %41, %42 : vector<24x32xf32>
    %44 = vector.broadcast %40 : vector<1x32xf32> to vector<24x32xf32>
    %45 = arith.addf %43, %44 : vector<24x32xf32>
    %c0_33 = arith.constant 0 : index
    %c0_34 = arith.constant 0 : index
    %46 = vector.load %arg6[%c0_33, %c0_34] : memref<24x24xf32, #tpu.memory_space<vmem>>, vector<24x24xf32>
    %c1_35 = arith.constant 1 : index
    %c0_36 = arith.constant 0 : index
    %47 = vector.load %arg10[%c1_35, %c0_36] : memref<8x32xf32, #tpu.memory_space<vmem>>, vector<1x32xf32>
    %c2 = arith.constant 2 : index
    %c0_37 = arith.constant 0 : index
    %48 = vector.load %arg10[%c2, %c0_37] : memref<8x32xf32, #tpu.memory_space<vmem>>, vector<1x32xf32>
    %c3 = arith.constant 3 : index
    %c0_38 = arith.constant 0 : index
    %49 = vector.load %arg10[%c3, %c0_38] : memref<8x32xf32, #tpu.memory_space<vmem>>, vector<1x32xf32>
    %cst_39 = arith.constant dense<0.000000e+00> : vector<24x32xf32>
    %50 = tpu.matmul %46, %45, %cst_39 {dimension_numbers = #tpu.dot_dimension_numbers<[1], [0], [0], [1], [0, 0, 1, 1], [], []>} : vector<24x24xf32>, vector<24x32xf32>, vector<24x32xf32> -> vector<24x32xf32>
    %51 = vector.broadcast %47 : vector<1x32xf32> to vector<24x32xf32>
    %52 = arith.mulf %51, %50 : vector<24x32xf32>
    %53 = arith.subf %45, %52 : vector<24x32xf32>
    %54 = arith.mulf %53, %53 : vector<24x32xf32>
    %cst_40 = arith.constant dense<0.000000e+00> : vector<24x32xf32>
    %55 = tpu.matmul %46, %54, %cst_40 {dimension_numbers = #tpu.dot_dimension_numbers<[1], [0], [0], [1], [0, 0, 1, 1], [], []>} : vector<24x24xf32>, vector<24x32xf32>, vector<24x32xf32> -> vector<24x32xf32>
    %cst_41 = arith.constant 9.99999974E-6 : f32
    %56 = vector.broadcast %cst_41 : f32 to vector<24x32xf32>
    %57 = arith.addf %55, %56 : vector<24x32xf32>
    %58 = math.rsqrt %57 : vector<24x32xf32>
    %59 = arith.mulf %53, %58 : vector<24x32xf32>
    %60 = vector.broadcast %48 : vector<1x32xf32> to vector<24x32xf32>
    %61 = arith.mulf %59, %60 : vector<24x32xf32>
    %62 = vector.broadcast %49 : vector<1x32xf32> to vector<24x32xf32>
    %63 = arith.addf %61, %62 : vector<24x32xf32>
    %cst_42 = arith.constant 0.000000e+00 : f32
    %64 = vector.broadcast %cst_42 : f32 to vector<24x32xf32>
    %65 = arith.cmpf ogt, %63, %64 : vector<24x32xf32>
    %cst_43 = arith.constant 0.000000e+00 : f32
    %66 = vector.broadcast %cst_43 : f32 to vector<24x32xf32>
    %67 = arith.minimumf %63, %66 : vector<24x32xf32>
    %68 = math.exp %67 : vector<24x32xf32>
    %cst_44 = arith.constant 1.000000e+00 : f32
    %69 = vector.broadcast %cst_44 : f32 to vector<24x32xf32>
    %70 = arith.subf %68, %69 : vector<24x32xf32>
    %71 = arith.select %65, %63, %70 : vector<24x32xi1>, vector<24x32xf32>
    %c0_45 = arith.constant 0 : index
    %c0_46 = arith.constant 0 : index
    %c0_47 = arith.constant 0 : index
    %72 = vector.load %arg11[%c0_45, %c0_46, %c0_47] : memref<1x24x32xf32, #tpu.memory_space<vmem>>, vector<1x24x32xf32>
    %73 = vector.shape_cast %72 : vector<1x24x32xf32> to vector<24x32xf32>
    %74 = vector.shape_cast %71 : vector<24x32xf32> to vector<1x24x32xf32>
    tpu.vector_store %arg11[%c0_45, %c0_46, %c0_47], %74 {strides = array<i32>} : memref<1x24x32xf32, #tpu.memory_space<vmem>>, vector<1x24x32xf32>,
    return
  }
  func.func @transform_0(%arg0: i32) -> (i32, i32, i32) {
    %c0_i32 = arith.constant 0 : i32
    %c0_i32_0 = arith.constant 0 : i32
    %c0_i32_1 = arith.constant 0 : i32
    return %arg0, %c0_i32, %c0_i32_0 : i32, i32, i32
  }
  func.func @transform_1(%arg0: i32) -> (i32, i32, i32) {
    %c0_i32 = arith.constant 0 : i32
    %c0_i32_0 = arith.constant 0 : i32
    %c0_i32_1 = arith.constant 0 : i32
    return %arg0, %c0_i32, %c0_i32_0 : i32, i32, i32
  }
  func.func @transform_2(%arg0: i32) -> (i32, i32, i32) {
    %c0_i32 = arith.constant 0 : i32
    %c0_i32_0 = arith.constant 0 : i32
    %c0_i32_1 = arith.constant 0 : i32
    return %arg0, %c0_i32, %c0_i32_0 : i32, i32, i32
  }
  func.func @transform_3(%arg0: i32) -> (i32, i32, i32) {
    %c0_i32 = arith.constant 0 : i32
    %c0_i32_0 = arith.constant 0 : i32
    %c0_i32_1 = arith.constant 0 : i32
    return %arg0, %c0_i32, %c0_i32_0 : i32, i32, i32
  }
  func.func @transform_4(%arg0: i32) -> (i32, i32, i32) {
    %c0_i32 = arith.constant 0 : i32
    %c0_i32_0 = arith.constant 0 : i32
    %c0_i32_1 = arith.constant 0 : i32
    return %arg0, %c0_i32, %c0_i32_0 : i32, i32, i32
  }
  func.func @transform_5(%arg0: i32) -> (i32, i32) {
    %c0_i32 = arith.constant 0 : i32
    %c0_i32_0 = arith.constant 0 : i32
    %c0_i32_1 = arith.constant 0 : i32
    return %c0_i32, %c0_i32_0 : i32, i32
  }
  func.func @transform_6(%arg0: i32) -> (i32, i32) {
    %c0_i32 = arith.constant 0 : i32
    %c0_i32_0 = arith.constant 0 : i32
    %c0_i32_1 = arith.constant 0 : i32
    return %c0_i32, %c0_i32_0 : i32, i32
  }
  func.func @transform_7(%arg0: i32) -> (i32, i32) {
    %c0_i32 = arith.constant 0 : i32
    %c0_i32_0 = arith.constant 0 : i32
    %c0_i32_1 = arith.constant 0 : i32
    return %c0_i32, %c0_i32_0 : i32, i32
  }
  func.func @transform_8(%arg0: i32) -> (i32, i32, i32) {
    %c0_i32 = arith.constant 0 : i32
    %c0_i32_0 = arith.constant 0 : i32
    %c0_i32_1 = arith.constant 0 : i32
    %c0_i32_2 = arith.constant 0 : i32
    return %c0_i32, %c0_i32_0, %c0_i32_1 : i32, i32, i32
  }
  func.func @transform_9(%arg0: i32) -> (i32, i32) {
    %c0_i32 = arith.constant 0 : i32
    %c0_i32_0 = arith.constant 0 : i32
    %c0_i32_1 = arith.constant 0 : i32
    return %c0_i32, %c0_i32_0 : i32, i32
  }
  func.func @transform_10(%arg0: i32) -> (i32, i32, i32) {
    %c0_i32 = arith.constant 0 : i32
    %c0_i32_0 = arith.constant 0 : i32
    %c0_i32_1 = arith.constant 0 : i32
    return %arg0, %c0_i32, %c0_i32_0 : i32, i32, i32
  }
}

module attributes {stable_mosaic.version = 11 : i64} {
  func.func @_readout_kernel(%arg0: i32, %arg1: memref<2x12x32xf32, #tpu.memory_space<vmem>>, %arg2: memref<3x32x32xf32, #tpu.memory_space<vmem>>, %arg3: memref<1x32xf32, #tpu.memory_space<vmem>>, %arg4: memref<32x4xf32, #tpu.memory_space<vmem>>, %arg5: memref<1x4xf32, #tpu.memory_space<vmem>>, %arg6: memref<2x4xf32, #tpu.memory_space<vmem>>) attributes {dimension_semantics = [#tpu.dimension_semantics<parallel>], iteration_bounds = array<i64: 1>, scalar_prefetch = 0 : i64, scratch_operands = 0 : i64, tpu.core_type = #tpu.core_type<tc>, window_params = [{transform_indices = @transform_0, window_bounds = array<i64: 2, 12, 32>}, {pipeline_mode = #tpu.pipeline_mode<synchronous>, transform_indices = @transform_1, window_bounds = array<i64: 3, 32, 32>}, {pipeline_mode = #tpu.pipeline_mode<synchronous>, transform_indices = @transform_2, window_bounds = array<i64: 1, 32>}, {pipeline_mode = #tpu.pipeline_mode<synchronous>, transform_indices = @transform_3, window_bounds = array<i64: 32, 4>}, {pipeline_mode = #tpu.pipeline_mode<synchronous>, transform_indices = @transform_4, window_bounds = array<i64: 1, 4>}, {transform_indices = @transform_5, window_bounds = array<i64: 2, 4>}]} {
    %c0 = arith.constant 0 : index
    %c0_0 = arith.constant 0 : index
    %c0_1 = arith.constant 0 : index
    %0 = vector.load %arg1[%c0, %c0_0, %c0_1] : memref<2x12x32xf32, #tpu.memory_space<vmem>>, vector<2x12x32xf32>
    %cst = arith.constant dense<0.000000e+00> : vector<2x32xf32>
    %1 = vector.multi_reduction <add>, %0, %cst [1] : vector<2x12x32xf32> to vector<2x32xf32>
    %cst_2 = arith.constant 0.0833333358 : f32
    %2 = vector.broadcast %cst_2 : f32 to vector<2x32xf32>
    %3 = arith.mulf %1, %2 : vector<2x32xf32>
    %cst_3 = arith.constant dense<0xFF800000> : vector<2x32xf32>
    %4 = vector.multi_reduction <maximumf>, %0, %cst_3 [1] : vector<2x12x32xf32> to vector<2x32xf32>
    %c0_4 = arith.constant 0 : index
    %c0_5 = arith.constant 0 : index
    %c0_6 = arith.constant 0 : index
    %5 = vector.load %arg2[%c0_4, %c0_5, %c0_6] : memref<3x32x32xf32, #tpu.memory_space<vmem>>, vector<1x32x32xf32>
    %6 = vector.shape_cast %5 : vector<1x32x32xf32> to vector<32x32xf32>
    %cst_7 = arith.constant dense<0.000000e+00> : vector<2x32xf32>
    %7 = tpu.matmul %3, %6, %cst_7 {dimension_numbers = #tpu.dot_dimension_numbers<[1], [0], [0], [1], [0, 0, 1, 1], [], []>} : vector<2x32xf32>, vector<32x32xf32>, vector<2x32xf32> -> vector<2x32xf32>
    %c1 = arith.constant 1 : index
    %c0_8 = arith.constant 0 : index
    %c0_9 = arith.constant 0 : index
    %8 = vector.load %arg2[%c1, %c0_8, %c0_9] : memref<3x32x32xf32, #tpu.memory_space<vmem>>, vector<1x32x32xf32>
    %9 = vector.shape_cast %8 : vector<1x32x32xf32> to vector<32x32xf32>
    %cst_10 = arith.constant dense<0.000000e+00> : vector<2x32xf32>
    %10 = tpu.matmul %4, %9, %cst_10 {dimension_numbers = #tpu.dot_dimension_numbers<[1], [0], [0], [1], [0, 0, 1, 1], [], []>} : vector<2x32xf32>, vector<32x32xf32>, vector<2x32xf32> -> vector<2x32xf32>
    %11 = arith.addf %7, %10 : vector<2x32xf32>
    %c2 = arith.constant 2 : index
    %c0_11 = arith.constant 0 : index
    %c0_12 = arith.constant 0 : index
    %12 = vector.load %arg2[%c2, %c0_11, %c0_12] : memref<3x32x32xf32, #tpu.memory_space<vmem>>, vector<1x32x32xf32>
    %13 = vector.shape_cast %12 : vector<1x32x32xf32> to vector<32x32xf32>
    %cst_13 = arith.constant dense<0.000000e+00> : vector<2x32xf32>
    %14 = tpu.matmul %1, %13, %cst_13 {dimension_numbers = #tpu.dot_dimension_numbers<[1], [0], [0], [1], [0, 0, 1, 1], [], []>} : vector<2x32xf32>, vector<32x32xf32>, vector<2x32xf32> -> vector<2x32xf32>
    %15 = arith.addf %11, %14 : vector<2x32xf32>
    %c0_14 = arith.constant 0 : index
    %c0_15 = arith.constant 0 : index
    %16 = vector.load %arg3[%c0_14, %c0_15] : memref<1x32xf32, #tpu.memory_space<vmem>>, vector<1x32xf32>
    %17 = vector.broadcast %16 : vector<1x32xf32> to vector<2x32xf32>
    %18 = arith.addf %15, %17 : vector<2x32xf32>
    %cst_16 = arith.constant 0.000000e+00 : f32
    %19 = vector.broadcast %cst_16 : f32 to vector<2x32xf32>
    %20 = arith.maximumf %18, %19 : vector<2x32xf32>
    %c0_17 = arith.constant 0 : index
    %c0_18 = arith.constant 0 : index
    %21 = vector.load %arg4[%c0_17, %c0_18] : memref<32x4xf32, #tpu.memory_space<vmem>>, vector<32x4xf32>
    %cst_19 = arith.constant dense<0.000000e+00> : vector<2x4xf32>
    %22 = tpu.matmul %20, %21, %cst_19 {dimension_numbers = #tpu.dot_dimension_numbers<[1], [0], [0], [1], [0, 0, 1, 1], [], []>} : vector<2x32xf32>, vector<32x4xf32>, vector<2x4xf32> -> vector<2x4xf32>
    %c0_20 = arith.constant 0 : index
    %c0_21 = arith.constant 0 : index
    %23 = vector.load %arg5[%c0_20, %c0_21] : memref<1x4xf32, #tpu.memory_space<vmem>>, vector<1x4xf32>
    %24 = vector.broadcast %23 : vector<1x4xf32> to vector<2x4xf32>
    %25 = arith.addf %22, %24 : vector<2x4xf32>
    %cst_22 = arith.constant dense<0xFF800000> : vector<2xf32>
    %26 = vector.multi_reduction <maximumf>, %25, %cst_22 [1] : vector<2x4xf32> to vector<2xf32>
    %27 = vector.shape_cast %26 : vector<2xf32> to vector<2x1xf32>
    %28 = vector.broadcast %27 : vector<2x1xf32> to vector<2x4xf32>
    %29 = arith.subf %25, %28 : vector<2x4xf32>
    %30 = math.exp %29 : vector<2x4xf32>
    %cst_23 = arith.constant dense<0.000000e+00> : vector<2xf32>
    %31 = vector.multi_reduction <add>, %30, %cst_23 [1] : vector<2x4xf32> to vector<2xf32>
    %32 = vector.shape_cast %31 : vector<2xf32> to vector<2x1xf32>
    %33 = math.log %32 : vector<2x1xf32>
    %34 = vector.broadcast %33 : vector<2x1xf32> to vector<2x4xf32>
    %35 = arith.subf %29, %34 : vector<2x4xf32>
    %c0_24 = arith.constant 0 : index
    %c0_25 = arith.constant 0 : index
    %36 = vector.load %arg6[%c0_24, %c0_25] : memref<2x4xf32, #tpu.memory_space<vmem>>, vector<2x4xf32>
    tpu.vector_store %arg6[%c0_24, %c0_25], %35 {strides = array<i32>} : memref<2x4xf32, #tpu.memory_space<vmem>>, vector<2x4xf32>,
    return
  }
  func.func @transform_0(%arg0: i32) -> (i32, i32, i32) {
    %c0_i32 = arith.constant 0 : i32
    %c0_i32_0 = arith.constant 0 : i32
    %c0_i32_1 = arith.constant 0 : i32
    return %arg0, %c0_i32, %c0_i32_0 : i32, i32, i32
  }
  func.func @transform_1(%arg0: i32) -> (i32, i32, i32) {
    %c0_i32 = arith.constant 0 : i32
    %c0_i32_0 = arith.constant 0 : i32
    %c0_i32_1 = arith.constant 0 : i32
    %c0_i32_2 = arith.constant 0 : i32
    return %c0_i32, %c0_i32_0, %c0_i32_1 : i32, i32, i32
  }
  func.func @transform_2(%arg0: i32) -> (i32, i32) {
    %c0_i32 = arith.constant 0 : i32
    %c0_i32_0 = arith.constant 0 : i32
    %c0_i32_1 = arith.constant 0 : i32
    return %c0_i32, %c0_i32_0 : i32, i32
  }
  func.func @transform_3(%arg0: i32) -> (i32, i32) {
    %c0_i32 = arith.constant 0 : i32
    %c0_i32_0 = arith.constant 0 : i32
    %c0_i32_1 = arith.constant 0 : i32
    return %c0_i32, %c0_i32_0 : i32, i32
  }
  func.func @transform_4(%arg0: i32) -> (i32, i32) {
    %c0_i32 = arith.constant 0 : i32
    %c0_i32_0 = arith.constant 0 : i32
    %c0_i32_1 = arith.constant 0 : i32
    return %c0_i32, %c0_i32_0 : i32, i32
  }
  func.func @transform_5(%arg0: i32) -> (i32, i32) {
    %c0_i32 = arith.constant 0 : i32
    %c0_i32_0 = arith.constant 0 : i32
    return %arg0, %c0_i32 : i32, i32
  }
}

</mosaic_0001>

<bundles_post_ra>
// kernel: msmesage_forward.3
= control target key start
LH: loop header
LB: loop body
LE: loop exit
PB: predicated region body
PF: predicated region fallthrough
CT: control target
= control target key end

     0   :  { %vm72_vm0 = vcmask 261120   ;;  %vm112_vm1 = vcmask 130048   ;;  %vm583_vm2 = vcmask 523264   ;;  %s1359_s2 = inlined_call_operand.vmem [shape: bf16[1,32,16], index: 2, kind: input, shape index: {}]   ;;  %s1360_s0 = inlined_call_operand.vmem [shape: bf16[1,32,32], index: 0, kind: input, shape index: {}]   ;;  %s1361_s8 = inlined_call_operand.vmem [shape: bf16[2,16,32], index: 8, kind: input, shape index: {}]   ;;  %s1362_s3 = inlined_call_operand.vmem [shape: bf16[1,32,32], index: 3, kind: input, shape index: {}]   ;;  %s1363_s9 = inlined_call_operand.vmem [shape: f32[8,32], index: 9, kind: input, shape index: {}]   ;;  %s1364_s1 = inlined_call_operand.vmem [shape: bf16[1,32,32], index: 1, kind: input, shape index: {}]   ;;  %s1365_s6 = inlined_call_operand.vmem [shape: bf16[32,192], index: 6, kind: input, shape index: {}]   ;;  %s1366_s5 = inlined_call_operand.vmem [shape: f32[32,32], index: 5, kind: input, shape index: {}]   ;;  %s1367_s7 = inlined_call_operand.vmem [shape: bf16[192,32], index: 7, kind: input, shape index: {}]   ;;  %s1368_s4 = inlined_call_operand.vmem [shape: bf16[1,32,192], index: 4, kind: input, shape index: {}]   ;;  %s1369_s10 = inlined_call_operand.vmem [shape: f32[1,32,32], index: 10, kind: output, shape index: {0}]   ;;  %s1370_s11 = inlined_call_operand.vmem [shape: f32[1,1,32], index: 11, kind: output, shape index: {1}]  }
   0x1   :  { %v945_v0 = vld [vmem:[%s1359_s2 + $0x8] sm:$0xff]  ;;  %v944_v1 = vld [vmem:[%s1359_s2] sm:$0xff]  ;;  %v956_v31 = vld [vmem:[%s1365_s6 + $0x14] sm:$0xf] }
   0x2   :  { %85 = vmatpush.bf16.msra.mxu0 %v945_v0  ;;  %v946_v2 = vld [vmem:[%s1360_s0] sm:$0xff]  ;;  %v947_v3 = vld [vmem:[%s1360_s0 + $0x8] sm:$0xff]  ;;  %v875_v32 = vld [vmem:[%s1365_s6 + $0x18] sm:$0xf0] }
   0x3   :  { %v949_v4 = vld [vmem:[%s1361_s8 + $0x8] sm:$0xff]  ;;  %v948_v5 = vld [vmem:[%s1361_s8] sm:$0xff]  ;;  %v878_v37 = vor.u32 %v956_v31, %v875_v32  ;;  %v873_v40 = vld [vmem:[%s1365_s6 + $0x10] sm:$0xf] }
   0x4   :  { %126 = vmatpush.bf16.msra.mxu1 %v949_v4  ;;  %970 = vmatpush.bf16.msra.mxu3 %v949_v4  ;;  %v953_v6 = vld [vmem:[%s1362_s3 + $0x8] sm:$0xff]  ;;  %v952_v7 = vld [vmem:[%s1362_s3] sm:$0xff]  ;;  %v957_v41 = vld [vmem:[%s1365_s6 + $0x14] sm:$0xf0] }
   0x5   :  { %971 = vmatpush.bf16.msra.mxu2 %v948_v5  ;;  %v950_v14 = vld [vmem:[%s1364_s1] sm:$0xff]  ;;  %v951_v15 = vld [vmem:[%s1364_s1 + $0x8] sm:$0xff]  ;;  %v874_v42 = vor.u32 %v957_v41, %v873_v40  ;;  %v1149_v51 = vld [vmem:[%s1366_s5 + $0x10] sm:$0xff] }
   0x6   :  { %86 = vmatpush.bf16.msra.mxu0 %v944_v1  ;;  %v972_v26 = vld [vmem:[%s1363_s9] ss:$0 sm:$0xff]  ;;  %v954_v38 = vld [vmem:[%s1365_s6 + $0x4] sm:$0xf]  ;;  %v867_v39 = vld [vmem:[%s1365_s6 + $0x8] sm:$0xf0] }
   0x7   :  { %825 = vmatmul.msk.bf16.vlgmr.msra.gmra.mxu1 %vm112_vm1, %v944_v1  ;;  %826 = vmatmul.msk.bf16.vlgmr.msra.gmra.mxu3 %vm112_vm1, %v945_v0  ;;  %v1115_v36 = vld [vmem:[%s1366_s5] sm:$0xff]  ;;  %v955_v44 = vld [vmem:[%s1365_s6 + $0x4] sm:$0xf0]  ;;  %v870_v45 = vor.u32 %v954_v38, %v867_v39  ;;  %v1156_v53 = vld [vmem:[%s1366_s5 + $0x18] sm:$0xff] }
   0x8   :  { %v865_v43 = vld [vmem:[%s1365_s6] sm:$0xf]  ;;  %v1141_v48 = vld [vmem:[%s1366_s5 + $0x8] sm:$0xff]  ;;  %v969_v55 = vld [vmem:[%s1367_s7 + $0x58] sm:$0xff] }
   0x9   :  { %817 = vmatmul.msk.bf16.vlgmr.msra.gmra.mxu0 %vm72_vm0, %v946_v2  ;;  %412 = vmatpush.bf16.msrb.mxu2 %v953_v6  ;;  %v866_v46 = vor.u32 %v955_v44, %v865_v43  ;;  %v968_v57 = vld [vmem:[%s1367_s7 + $0x50] sm:$0xff]  ;;  %v967_v58 = vld [vmem:[%s1367_s7 + $0x48] sm:$0xff]  ;;  %v966_v60 = vld [vmem:[%s1367_s7 + $0x40] sm:$0xff] }
   0xa   :  { %157 = vmatpush.bf16.msrb.mxu0 %v948_v5  ;;  %v973_v62 = vld [vmem:[%s1363_s9 + $0x1] ss:$0 sm:$0xff]  ;;  %v959_v38 = vld [vmem:[%s1367_s7 + $0x8] sm:$0xff] }
   0xb   :  { %v958_v41 = vld [vmem:[%s1367_s7] sm:$0xff] }
   0xd   :  { %413 = vmatpush.bf16.msrb.mxu2 %v952_v7 }
   0xe   :  { %459 = vmatpush.bf16.msra.mxu0 %v874_v42 }
  0x12   :  { %460 = vmatpush.bf16.msra.mxu0 %v866_v46 }
  0x19   :  { %818 = vmatmul.msk.bf16.gmra.mxu0 %vm72_vm0, %v947_v3 }
  0x84   :  { %v128_v16 = vpop.f32.mrf.mxu1 }
  0x86   :  { %v88_v8 = vpop.f32.mrf.mxu0 }
  0x8a   :  { %v133_v17 = vpop.f32.mrf.mxu3 }
  0x8c   :  { %v130_v20 = vpop.f32.mrf.mxu1 }
  0x8e   :  { %v90_v9 = vpop.f32.mrf.mxu0 }
  0x8f   :  { %v98_v10 = vpack.c.bf16 %v90_v9, %v88_v8 }
  0x91   :  { %831 = vmatmul.msk.bf16.vlgmr.msrb.gmra.mxu0 %vm112_vm1, %v98_v10  ;;  %v1197_v10 = vld [vmem:[%s1368_s4] sm:$0xff] }
  0x92   :  { %v135_v21 = vpop.f32.mrf.mxu3  ;;  %646 = vmatpush.bf16.msrb.mxu0 %v874_v42  ;;  %v491_v39 = vunpack.c.l.bf16 %v1197_v10 }
  0x96   :  { %v93_v11 = vpop.f32.mrf.mxu0  ;;  %647 = vmatpush.bf16.msrb.mxu0 %v866_v46 }
  0x9e   :  { %v95_v12 = vpop.f32.mrf.mxu0 }
  0x9f   :  { %v99_v13 = vpack.c.bf16 %v95_v12, %v93_v11 }
  0xa1   :  { %832 = vmatmul.msk.bf16.vlgmr.msra.gmra.mxu2 %vm112_vm1, %v99_v13  ;;  %v1204_v13 = vld [vmem:[%s1368_s4 + $0x8] sm:$0xff] }
  0xa2   :  { %613 = vmatpush.bf16.msra.mxu2 %v969_v55  ;;  %v493_v40 = vunpack.c.l.bf16 %v1204_v13 }
  0xa6   :  { %614 = vmatpush.bf16.msra.mxu2 %v968_v57 }
  0xaa   :  { %615 = vmatpush.bf16.msra.mxu2 %v967_v58 }
  0xae   :  { %616 = vmatpush.bf16.msra.mxu2 %v966_v60 }
  0xb1   :  { %861 = vmatmul.msk.bf16.vlgmr.msrb.gmra.mxu2 %vm72_vm0, %v950_v14  ;;  %v492_v14 = vunpack.c.h.bf16 %v1197_v10 }
  0xb2   :  { %735 = vmatpush.bf16.msrb.mxu2 %v969_v55 }
  0xb6   :  { %736 = vmatpush.bf16.msrb.mxu2 %v968_v57 }
  0xba   :  { %737 = vmatpush.bf16.msrb.mxu2 %v967_v58 }
  0xbe   :  { %738 = vmatpush.bf16.msrb.mxu2 %v966_v60 }
  0xc1   :  { %862 = vmatmul.msk.bf16.gmra.mxu2 %vm72_vm0, %v951_v15 }
 0x10e   :  { %v159_v18 = vpop.f32.mrf.mxu0 }
 0x10f   :  { %v160_v29 = vadd.f32 %v159_v18, %v128_v16  ;;  %v965_v16 = vld [vmem:[%s1367_s7 + $0x38] sm:$0xff] }
 0x111   :  { %v1110_v35 = vadd.f32 %v972_v26, %v160_v29 }
 0x116   :  { %v161_v22 = vpop.f32.mrf.mxu0 }
 0x117   :  { %v162_v27 = vadd.f32 %v161_v22, %v130_v20 }
 0x119   :  { %v1107_v33 = vadd.f32 %v972_v26, %v162_v27 }
 0x124   :  { %v164_v19 = vpop.f32.mrf.mxu2 }
 0x125   :  { %v165_v24 = vadd.f32 %v164_v19, %v133_v17  ;;  %v494_v17 = vunpack.c.h.bf16 %v1204_v13  ;;  %v964_v19 = vld [vmem:[%s1367_s7 + $0x30] sm:$0xff] }
 0x127   :  { %v1098_v30 = vadd.f32 %v972_v26, %v165_v24 }
 0x12c   :  { %v166_v23 = vpop.f32.mrf.mxu2 }
 0x12d   :  { %v167_v25 = vadd.f32 %v166_v23, %v135_v21  ;;  %v963_v23 = vld [vmem:[%s1367_s7 + $0x28] sm:$0xff] }
 0x12f   :  { %v1095_v28 = vadd.f32 %v972_v26, %v167_v25  ;;  %v962_v25 = vld [vmem:[%s1367_s7 + $0x20] sm:$0xff]  ;;  %v1234_v26 = vld [vmem:[%s1368_s4 + $0x10] sm:$0xff] }
 0x130   :  { %v496_v29 = vunpack.c.h.bf16 %v1234_v26  ;;  %v495_v46 = vunpack.c.l.bf16 %v1234_v26 }
 0x131   :  { %205 = vmatpush.msrb.mxu3 %v1095_v28 }
 0x133   :  { %206 = vmatpush.msrb.mxu3 %v1098_v30 }
 0x134   :  { %v415_v34 = vpop.f32.mrf.mxu2 }
 0x135   :  { %207 = vmatpush.msrb.mxu3 %v1107_v33 }
 0x137   :  { %208 = vmatpush.msrb.mxu3 %v1110_v35 }
 0x138   :  { %833 = vmatmul.msk.f32.vlgmr.msrb.gmra.mxu3 %vm72_vm0, %v1115_v36 }
 0x139   :  { %478 = vmatpush.bf16.msra.mxu3 %v878_v37 }
 0x13c   :  { %v417_v47 = vpop.f32.mrf.mxu2 }
 0x13d   :  { %479 = vmatpush.bf16.msra.mxu3 %v870_v45  ;;  %v425_v49 = vpack.c.bf16 %v417_v47, %v415_v34 }
 0x13f   :  { %879 = vmatmul.msk.bf16.vlgmr.msra.gmra.mxu0 %vm72_vm0, %v425_v49 }
 0x140   :  { %834 = vmatmul.msk.f32.gmra.mxu3 %vm72_vm0, %v1141_v48 }
 0x141   :  { %665 = vmatpush.bf16.msrb.mxu3 %v878_v37 }
 0x144   :  { %v420_v50 = vpop.f32.mrf.mxu2 }
 0x145   :  { %666 = vmatpush.bf16.msrb.mxu3 %v870_v45 }
 0x148   :  { %835 = vmatmul.msk.f32.gmra.mxu3 %vm72_vm0, %v1149_v51 }
 0x14c   :  { %v422_v52 = vpop.f32.mrf.mxu2 }
 0x14d   :  { %v426_v54 = vpack.c.bf16 %v422_v52, %v420_v50 }
 0x14f   :  { %880 = vmatmul.msk.bf16.gmra.mxu0 %vm72_vm0, %v426_v54 }
 0x150   :  { %836 = vmatmul.msk.f32.gmra.mxu3 %vm72_vm0, %v1156_v53 }
 0x158   :  { %881 = vmatmul.msk.bf16.vlgmr.msra.gmra.mxu3 %vm72_vm0, %v425_v49 }
 0x168   :  { %882 = vmatmul.msk.bf16.gmra.mxu3 %vm72_vm0, %v426_v54 }
 0x1bb   :  { %v210_v56 = vpop.f32.mrf.mxu3 }
 0x1bc   :  { %v223_v3 = vmul.f32 %v973_v62, %v210_v56  ;;  %v462_v24 = vpop.f32.mrf.mxu0 }
 0x1bd   :  { %v499_v42 = vmul.f32 %v491_v39, %v462_v24 }
 0x1be   :  { %v1190_v8 = vsub.f32 %v1110_v35, %v223_v3 }
 0x1c0   :  { %v231_v15 = vmul.f32 %v1190_v8, %v1190_v8 }
 0x1c3   :  { %v213_v59 = vpop.f32.mrf.mxu3 }
 0x1c4   :  { %v224_v1 = vmul.f32 %v973_v62, %v213_v59  ;;  %v464_v35 = vpop.f32.mrf.mxu0 }
 0x1c5   :  { %v501_v43 = vmul.f32 %v493_v40, %v464_v35 }
 0x1c6   :  { %v1185_v6 = vsub.f32 %v1107_v33, %v224_v1  ;;  %v960_v33 = vld [vmem:[%s1367_s7 + $0x10] sm:$0xff] }
 0x1c7   :  { %v507_v45 = vpack.c.bf16 %v501_v43, %v499_v42 }
 0x1c8   :  { %v232_v12 = vmul.f32 %v1185_v6, %v1185_v6 }
 0x1cb   :  { %v216_v61 = vpop.f32.mrf.mxu3 }
 0x1cc   :  { %v225_v63 = vmul.f32 %v973_v62, %v216_v61  ;;  %v467_v44 = vpop.f32.mrf.mxu0 }
 0x1cd   :  { %v503_v49 = vmul.f32 %v495_v46, %v467_v44 }
 0x1ce   :  { %v1179_v4 = vsub.f32 %v1098_v30, %v225_v63  ;;  %v961_v30 = vld [vmem:[%s1367_s7 + $0x18] sm:$0xff] }
 0x1d0   :  { %v233_v9 = vmul.f32 %v1179_v4, %v1179_v4 }
 0x1d3   :  { %v219_v0 = vpop.f32.mrf.mxu3 }
 0x1d4   :  { %v226_v2 = vmul.f32 %v973_v62, %v219_v0 }
 0x1d6   :  { %v1182_v5 = vsub.f32 %v1095_v28, %v226_v2  ;;  %v1239_v28 = vld [vmem:[%s1368_s4 + $0x18] sm:$0xff]  ;;  %v1279_v2 = vld [vmem:[%s1363_s9 + $0x2] ss:$0 sm:$0xff] }
 0x1d7   :  { %v498_v31 = vunpack.c.h.bf16 %v1239_v28  ;;  %v497_v47 = vunpack.c.l.bf16 %v1239_v28 }
 0x1d8   :  { %v234_v7 = vmul.f32 %v1182_v5, %v1182_v5 }
 0x1da   :  { %247 = vmatpush.msrb.mxu1 %v234_v7 }
 0x1db   :  { %v481_v11 = vpop.f32.mrf.mxu3 }
 0x1dc   :  { %248 = vmatpush.msrb.mxu1 %v233_v9  ;;  %v500_v18 = vmul.f32 %v492_v14, %v481_v11  ;;  %v1285_v11 = vld [vmem:[%s1363_s9 + $0x3] ss:$0 sm:$0xff] }
 0x1de   :  { %249 = vmatpush.msrb.mxu1 %v232_v12 }
 0x1e0   :  { %250 = vmatpush.msrb.mxu1 %v231_v15 }
 0x1e1   :  { %837 = vmatmul.msk.f32.vlgmr.msrb.gmra.mxu1 %vm72_vm0, %v1115_v36 }
 0x1e2   :  { %590 = vmatpush.bf16.msra.mxu1 %v965_v16 }
 0x1e3   :  { %v483_v20 = vpop.f32.mrf.mxu3 }
 0x1e4   :  { %v502_v21 = vmul.f32 %v494_v17, %v483_v20 }
 0x1e6   :  { %v508_v22 = vpack.c.bf16 %v502_v21, %v500_v18  ;;  %591 = vmatpush.bf16.msra.mxu1 %v964_v19 }
 0x1e8   :  { %931 = vmatmul.msk.bf16.vlgmr.msra.gmra.mxu2 %vm583_vm2, %v508_v22 }
 0x1e9   :  { %838 = vmatmul.msk.f32.gmra.mxu1 %vm72_vm0, %v1141_v48  ;;  %v469_v48 = vpop.f32.mrf.mxu0 }
 0x1ea   :  { %592 = vmatpush.bf16.msra.mxu1 %v963_v23  ;;  %v505_v50 = vmul.f32 %v497_v47, %v469_v48 }
 0x1eb   :  { %v486_v27 = vpop.f32.mrf.mxu3 }
 0x1ec   :  { %v504_v32 = vmul.f32 %v496_v29, %v486_v27 }
 0x1ee   :  { %593 = vmatpush.bf16.msra.mxu1 %v962_v25 }
 0x1f1   :  { %839 = vmatmul.msk.f32.gmra.mxu1 %vm72_vm0, %v1149_v51  ;;  %v509_v51 = vpack.c.bf16 %v505_v50, %v503_v49 }
 0x1f2   :  { %594 = vmatpush.bf16.msra.mxu1 %v961_v30 }
 0x1f3   :  { %v488_v34 = vpop.f32.mrf.mxu3 }
 0x1f4   :  { %v506_v36 = vmul.f32 %v498_v31, %v488_v34 }
 0x1f6   :  { %v510_v37 = vpack.c.bf16 %v506_v36, %v504_v32  ;;  %595 = vmatpush.bf16.msra.mxu1 %v960_v33 }
 0x1f8   :  { %932 = vmatmul.msk.bf16.gmra.mxu2 %vm583_vm2, %v510_v37 }
 0x1f9   :  { %840 = vmatmul.msk.f32.gmra.mxu1 %vm72_vm0, %v1156_v53 }
 0x1fa   :  { %596 = vmatpush.bf16.msra.mxu1 %v959_v38 }
 0x1fe   :  { %597 = vmatpush.bf16.msra.mxu1 %v958_v41 }
 0x201   :  { %598 = vmatmul.bf16.vlgmr.msra.gmra.mxu1 %v507_v45 }
 0x202   :  { %712 = vmatpush.bf16.msrb.mxu1 %v965_v16 }
 0x206   :  { %713 = vmatpush.bf16.msrb.mxu1 %v964_v19 }
 0x20a   :  { %714 = vmatpush.bf16.msrb.mxu1 %v963_v23 }
 0x20e   :  { %715 = vmatpush.bf16.msrb.mxu1 %v962_v25 }
 0x211   :  { %603 = vmatmul.bf16.gmra.mxu1 %v509_v51 }
 0x212   :  { %716 = vmatpush.bf16.msrb.mxu1 %v961_v30 }
 0x216   :  { %717 = vmatpush.bf16.msrb.mxu1 %v960_v33 }
 0x21a   :  { %718 = vmatpush.bf16.msrb.mxu1 %v959_v38 }
 0x21e   :  { %719 = vmatpush.bf16.msrb.mxu1 %v958_v41 }
 0x25e   :  { %v252_v52 = vpop.f32.mrf.mxu1 }
 0x25f   :  { %v253_v53 = vadd.f32 1e-05, %v252_v52 }
 0x261   :  { %976 = vrsqrt.f32 %v253_v53  ;;  %vm270_vm4 = vweird.f32 %v253_v53 }
 0x266   :  { %v255_v54 = vpop.f32.mrf.mxu1 }
 0x267   :  { %v977_v55 = vpop.eup %976  ;;  %v256_v56 = vadd.f32 1e-05, %v255_v54 }
 0x268   :  { %v265_v57 = vmul.f32 %v977_v55, %v253_v53  ;;  %vm271_vm3 = vweird.f32 %v977_v55 }
 0x269   :  { %978 = vrsqrt.f32 %v256_v56  ;;  %vm272_vm5 = vmor %vm270_vm4, %vm271_vm3  ;;  %vm280_vm7 = vweird.f32 %v256_v56 }
 0x26a   :  { %v266_v58 = vmul.f32 %v977_v55, %v265_v57 }
 0x26b   :  { %v618_v34 = vpop.f32.mrf.mxu2 }
 0x26c   :  { %v267_v59 = vmul.f32 0.5, %v266_v58 }
 0x26e   :  { %v268_v60 = vsub.f32 1.5, %v267_v59  ;;  %v258_v61 = vpop.f32.mrf.mxu1 }
 0x26f   :  { %v979_v62 = vpop.eup %978  ;;  %v259_v63 = vadd.f32 1e-05, %v258_v61 }
 0x270   :  { %v269_v0 = vmul.f32 %v977_v55, %v268_v60  ;;  %v275_v1 = vmul.f32 %v979_v62, %v256_v56  ;;  %vm281_vm6 = vweird.f32 %v979_v62 }
 0x271   :  { %980 = vrsqrt.f32 %v259_v63  ;;  %vm282_vm8 = vmor %vm280_vm7, %vm281_vm6  ;;  %vm290_vm10 = vweird.f32 %v259_v63 }
 0x272   :  { %v273_v3 = vsel %vm272_vm5, %v977_v55, %v269_v0  ;;  %v276_v7 = vmul.f32 %v979_v62, %v275_v1 }
 0x273   :  { %v304_v9 = vmul.f32 %v273_v3, %v1190_v8  ;;  %v620_v55 = vpop.f32.mrf.mxu2 }
 0x274   :  { %v277_v12 = vmul.f32 0.5, %v276_v7 }
 0x275   :  { %v309_v15 = vmul.f32 %v1279_v2, %v304_v9 }
 0x276   :  { %v278_v16 = vsub.f32 1.5, %v277_v12  ;;  %v261_v18 = vpop.f32.mrf.mxu1 }
 0x277   :  { %v981_v19 = vpop.eup %980  ;;  %v262_v20 = vadd.f32 1e-05, %v261_v18  ;;  %v314_v21 = vadd.f32 %v1285_v11, %v309_v15 }
 0x278   :  { %v279_v22 = vmul.f32 %v979_v62, %v278_v16  ;;  %v285_v23 = vmul.f32 %v981_v19, %v259_v63  ;;  %vm291_vm9 = vweird.f32 %v981_v19 }
 0x279   :  { %982 = vrsqrt.f32 %v262_v20  ;;  %v322_v8 = vmin.f32 %v314_v21, 0.0  ;;  %vm292_vm11 = vmor %vm290_vm10, %vm291_vm9  ;;  %vm300_vm13 = vweird.f32 %v262_v20  ;;  %vm318_vm15 = vcmp.gt.f32.partialorder %v314_v21, 0.0 }
 0x27a   :  { %v283_v24 = vsel %vm282_vm8, %v979_v62, %v279_v22  ;;  %v286_v25 = vmul.f32 %v981_v19, %v285_v23 }
 0x27b   :  { %v305_v27 = vmul.f32 %v283_v24, %v1185_v6  ;;  %v326_v30 = vmul.f32 1.442695, %v322_v8 }
 0x27c   :  { %v287_v32 = vmul.f32 0.5, %v286_v25 }
 0x27d   :  { %v310_v33 = vmul.f32 %v1279_v2, %v305_v27  ;;  %984 = vpow2.f32 %v326_v30 }
 0x27e   :  { %v288_v35 = vsub.f32 1.5, %v287_v32  ;;  %v599_v36 = vpop.f32.mrf.mxu1 }
 0x27f   :  { %v983_v37 = vpop.eup %982  ;;  %v315_v38 = vadd.f32 %v1285_v11, %v310_v33  ;;  %v1296_v0 = vadd.f32 %v618_v34, %v599_v36 }
 0x280   :  { %v289_v41 = vmul.f32 %v981_v19, %v288_v35  ;;  %v295_v42 = vmul.f32 %v983_v37, %v262_v20  ;;  %vm301_vm12 = vweird.f32 %v983_v37  ;;  %v623_v20 = vpop.f32.mrf.mxu2 }
 0x281   :  { %v323_v43 = vmin.f32 %v315_v38, 0.0  ;;  %vm302_vm14 = vmor %vm300_vm13, %vm301_vm12  ;;  %vm319_vm1 = vcmp.gt.f32.partialorder %v315_v38, 0.0 }
 0x282   :  { %v293_v44 = vsel %vm292_vm11, %v981_v19, %v289_v41  ;;  %v296_v45 = vmul.f32 %v983_v37, %v295_v42 }
 0x283   :  { %v306_v6 = vmul.f32 %v293_v44, %v1179_v4  ;;  %v328_v48 = vmul.f32 1.442695, %v323_v43  ;;  %v985_v50 = vpop.eup %984 }
 0x284   :  { %v297_v49 = vmul.f32 0.5, %v296_v45  ;;  %v841_v57 = vadd.f32 -1.0, %v985_v50 }
 0x285   :  { %v311_v51 = vmul.f32 %v1279_v2, %v306_v6  ;;  %986 = vpow2.f32 %v328_v48 }
 0x286   :  { %v298_v52 = vsub.f32 1.5, %v297_v49  ;;  %v601_v53 = vpop.f32.mrf.mxu1  ;;  %v338_v62 = vsel %vm318_vm15, %v314_v21, %v841_v57 }
 0x287   :  { %v316_v54 = vadd.f32 %v1285_v11, %v311_v51  ;;  %v1298_v1 = vadd.f32 %v620_v55, %v601_v53  ;;  %v628_v9 = vadd.f32 %v1296_v0, %v338_v62 }
 0x288   :  { %v299_v56 = vmul.f32 %v983_v37, %v298_v52  ;;  %v625_v24 = vpop.f32.mrf.mxu2 }
 0x289   :  { %v324_v58 = vmin.f32 %v316_v54, 0.0  ;;  %v690_v23 = vsel %vm72_vm0, %v628_v9, 0.0  ;;  %vm320_vm3 = vcmp.gt.f32.partialorder %v316_v54, 0.0 }
 0x28a   :  { %v303_v59 = vsel %vm302_vm14, %v983_v37, %v299_v56 }
 0x28b   :  { %v987_v60 = vpop.eup %986  ;;  %v307_v4 = vmul.f32 %v303_v59, %v1182_v5  ;;  %v330_v61 = vmul.f32 1.442695, %v324_v58 }
 0x28c   :  { %v842_v63 = vadd.f32 -1.0, %v987_v60 }
 0x28d   :  { %v312_v3 = vmul.f32 %v1279_v2, %v307_v4  ;;  %988 = vpow2.f32 %v330_v61 }
 0x28e   :  { %v339_v7 = vsel %vm319_vm1, %v315_v38, %v842_v63  ;;  %v604_v5 = vpop.f32.mrf.mxu1 }
 0x28f   :  { %v629_v12 = vadd.f32 %v1298_v1, %v339_v7  ;;  %v317_v15 = vadd.f32 %v1285_v11, %v312_v3  ;;  %v624_v30 = vadd.f32 %v623_v20, %v604_v5 }
 0x291   :  { %v693_v16 = vsel %vm72_vm0, %v629_v12, 0.0  ;;  %v632_v18 = vpack.c.bf16 %v629_v12, %v628_v9  ;;  %v325_v19 = vmin.f32 %v317_v15, 0.0  ;;  %vm321_vm4 = vcmp.gt.f32.partialorder %v317_v15, 0.0 }
 0x292   :  { %694 = vadd.xlane.f32.xlu1 %v693_v16 }
 0x293   :  { %933 = vmatmul.msk.bf16.vlgmr.msrb.gmra.mxu0 %vm72_vm0, %v632_v18  ;;  %935 = vmatmul.msk.bf16.vlgmr.msrb.gmra.mxu3 %vm72_vm0, %v632_v18  ;;  %v332_v2 = vmul.f32 1.442695, %v325_v19  ;;  %v989_v21 = vpop.eup %988  ;;  %v754_v18 = vld [vmem:[%s1363_s9 + $0x4] sm:$0x1] }
 0x294   :  { %v843_v22 = vadd.f32 -1.0, %v989_v21 }
 0x295   :  { %990 = vpow2.f32 %v332_v2 }
 0x296   :  { %v606_v8 = vpop.f32.mrf.mxu1  ;;  %v340_v25 = vsel %vm320_vm3, %v316_v54, %v843_v22 }
 0x297   :  { %v626_v32 = vadd.f32 %v625_v24, %v606_v8  ;;  %v630_v34 = vadd.f32 %v624_v30, %v340_v25 }
 0x299   :  { %v696_v38 = vsel %vm72_vm0, %v630_v34, 0.0 }
 0x29a   :  { %691 = vadd.xlane.f32.xlu1 %v690_v23 }
 0x29b   :  { %v991_v11 = vpop.eup %990 }
 0x29c   :  { %v844_v27 = vadd.f32 -1.0, %v991_v11 }
 0x29e   :  { %v341_v33 = vsel %vm321_vm4, %v317_v15, %v844_v27 }
 0x29f   :  { %v631_v35 = vadd.f32 %v626_v32, %v341_v33 }
 0x2a1   :  { %v699_v36 = vsel %vm72_vm0, %v631_v35, 0.0  ;;  %v633_v37 = vpack.c.bf16 %v631_v35, %v630_v34 }
 0x2a2   :  { %700 = vadd.xlane.f32.xlu0 %v699_v36 }
 0x2a3   :  { %934 = vmatmul.msk.bf16.gmra.mxu0 %vm72_vm0, %v633_v37  ;;  %936 = vmatmul.msk.bf16.gmra.mxu3 %vm72_vm0, %v633_v37 }
 0x2aa   :  { %697 = vadd.xlane.f32.xlu0 %v696_v38 }
 0x310   :  { %v649_v41 = vpop.f32.mrf.mxu0 }
 0x311   :  { %v678_v44 = vmul.f32 %v649_v41, %v491_v39 }
 0x315   :  { %v701_v59 = vpop.xlane.xlu0 %700 }
 0x316   :  { %v668_v42 = vpop.f32.mrf.mxu3  ;;  %v705_v12 = vmul.f32 %v701_v59, %v626_v32 }
 0x317   :  { %v679_v49 = vmul.f32 %v668_v42, %v492_v14 }
 0x318   :  { %v651_v43 = vpop.f32.mrf.mxu0 }
 0x319   :  { %v680_v45 = vmul.f32 %v651_v43, %v493_v40 }
 0x31b   :  { %v686_v6 = vpack.c.bf16 %v680_v45, %v678_v44 }
 0x31d   :  { %720 = vmatmul.bf16.vlgmr.msrb.gmra.mxu1 %v686_v6  ;;  %v698_v62 = vpop.xlane.xlu0 %697 }
 0x31e   :  { %v670_v48 = vpop.f32.mrf.mxu3 }
 0x31f   :  { %v681_v50 = vmul.f32 %v670_v48, %v494_v17  ;;  %v695_v17 = vpop.xlane.xlu1 %694 }
 0x320   :  { %v654_v51 = vpop.f32.mrf.mxu0  ;;  %v703_v26 = vmul.f32 %v695_v17, %v1298_v1 }
 0x321   :  { %v687_v52 = vpack.c.bf16 %v681_v50, %v679_v49  ;;  %v682_v39 = vmul.f32 %v654_v51, %v495_v46 }
 0x323   :  { %937 = vmatmul.msk.bf16.vlgmr.msrb.gmra.mxu2 %vm583_vm2, %v687_v52 }
 0x326   :  { %v673_v53 = vpop.f32.mrf.mxu3 }
 0x327   :  { %v683_v10 = vmul.f32 %v673_v53, %v496_v29  ;;  %v692_v58 = vpop.xlane.xlu1 %691 }
 0x328   :  { %v656_v54 = vpop.f32.mrf.mxu0  ;;  %v702_v46 = vmul.f32 %v692_v58, %v1296_v0  ;;  %v704_v0 = vmul.f32 %v698_v62, %v624_v30 }
 0x329   :  { %v684_v40 = vmul.f32 %v656_v54, %v497_v47 }
 0x32b   :  { %v688_v55 = vpack.c.bf16 %v684_v40, %v682_v39 }
 0x32d   :  { %725 = vmatmul.bf16.gmra.mxu1 %v688_v55 }
 0x32e   :  { %v675_v56 = vpop.f32.mrf.mxu3 }
 0x32f   :  { %v685_v13 = vmul.f32 %v675_v56, %v498_v31 }
 0x331   :  { %v689_v14 = vpack.c.bf16 %v685_v13, %v683_v10 }
 0x333   :  { %938 = vmatmul.msk.bf16.gmra.mxu2 %vm583_vm2, %v689_v14  ;;  %vm791_vm2 = vcmask 253952  }
 0x39a   :  { %v721_v57 = vpop.f32.mrf.mxu1 }
 0x39b   :  { %v722_v60 = vadd.f32 %v721_v57, %v702_v46 }
 0x3a2   :  { %v723_v47 = vpop.f32.mrf.mxu1 }
 0x3a3   :  { %v724_v28 = vadd.f32 %v723_v47, %v703_v26 }
 0x3a6   :  { %v740_v4 = vpop.f32.mrf.mxu2 }
 0x3a7   :  { %v741_v61 = vadd.f32 %v740_v4, %v722_v60 }
 0x3a9   :  { %750 = vst.msk [vmem:[%s1369_s10] sm:$0xff] %vm72_vm0, %v741_v61 }
 0x3aa   :  { %v726_v63 = vpop.f32.mrf.mxu1 }
 0x3ab   :  { %v727_v3 = vadd.f32 %v726_v63, %v704_v0 }
 0x3ae   :  { %v742_v29 = vpop.f32.mrf.mxu2 }
 0x3af   :  { %v743_v31 = vadd.f32 %v742_v29, %v724_v28 }
 0x3b1   :  { %751 = vst.msk [vmem:[%s1369_s10 + $0x8] sm:$0xff] %vm72_vm0, %v743_v31 }
 0x3b2   :  { %v728_v1 = vpop.f32.mrf.mxu1 }
 0x3b3   :  { %v729_v15 = vadd.f32 %v728_v1, %v705_v12 }
 0x3b6   :  { %v745_v7 = vpop.f32.mrf.mxu2 }
 0x3b7   :  { %v746_v9 = vadd.f32 %v745_v7, %v727_v3 }
 0x3b9   :  { %752 = vst.msk [vmem:[%s1369_s10 + $0x10] sm:$0xff] %vm72_vm0, %v746_v9 }
 0x3be   :  { %v747_v5 = vpop.f32.mrf.mxu2 }
 0x3bf   :  { %v748_v16 = vadd.f32 %v747_v5, %v729_v15 }
 0x3c1   :  { %753 = vst.msk [vmem:[%s1369_s10 + $0x18] sm:$0xff] %vm72_vm0, %v748_v16  ;;  %939 = vmatpush.xpose.msk.msra.mxu1 %vm72_vm0, %v748_v16 }
 0x3c5   :  { %940 = vmatpush.xpose.msk.msra.mxu1 %vm72_vm0, %v746_v9 }
 0x3c9   :  { %941 = vmatpush.xpose.msk.msra.mxu1 %vm72_vm0, %v743_v31 }
 0x3cd   :  { %942 = vmatpush.xpose.msk.msra.mxu1 %vm72_vm0, %v741_v61 }
 0x3d0   :  { %943 = vmatmul.msk.f32.vlgmr.msra.gmra.mxu1 %vm72_vm0, %v754_v18 }
 0x44d   :  { %v787_v19 = vpop.f32.mrf.mxu1 }
 0x44e   :  { %992 = vtanh.f32 %v787_v19 }
 0x454   :  { %v993_v20 = vpop.eup %992 }
 0x455   :  { %792 = vst.msk [vmem:[%s1370_s11] sm:$0x1] %vm791_vm2, %v993_v20 }

// kernel: msmesage_forward.5
= control target key start
LH: loop header
LB: loop body
LE: loop exit
PB: predicated region body
PF: predicated region fallthrough
CT: control target
= control target key end

     0   :  { %vm25_vm0 = vcmask 261120   ;;  %vm27_vm1 = vcmask 257024   ;;  %s383_s0 = inlined_call_operand.vmem [shape: f32[2,12,32], index: 0, kind: input, shape index: {}]   ;;  %s384_s1 = inlined_call_operand.vmem [shape: f32[3,32,32], index: 1, kind: input, shape index: {}]   ;;  %s385_s2 = inlined_call_operand.vmem [shape: f32[1,32], index: 2, kind: input, shape index: {}]   ;;  %s386_s3 = inlined_call_operand.vmem [shape: f32[32,4], index: 3, kind: input, shape index: {}]   ;;  %s387_s4 = inlined_call_operand.vmem [shape: f32[1,4], index: 4, kind: input, shape index: {}]   ;;  %s388_s5 = inlined_call_operand.hbm [shape: f32[2,4], index: 5, kind: output, shape index: {}]  }
   0x1   :  { %v232_v0 = vld [vmem:[%s384_s1 + $0x58] sm:$0xff]  ;;  %v231_v1 = vld [vmem:[%s384_s1 + $0x50] sm:$0xff]  ;;  %v230_v4 = vld [vmem:[%s384_s1 + $0x48] sm:$0xff] }
   0x2   :  { %v226_v2 = vld [vmem:[%s384_s1 + $0x38] sm:$0xff]  ;;  %147 = vmatpush.msra.mxu2 %v232_v0  ;;  %v225_v5 = vld [vmem:[%s384_s1 + $0x30] sm:$0xff]  ;;  %v229_v7 = vld [vmem:[%s384_s1 + $0x40] sm:$0xff] }
   0x3   :  { %92 = vmatpush.msra.mxu0 %v226_v2  ;;  %v68_v3 = vld [vmem:[%s384_s1 + $0x18] sm:$0xff]  ;;  %v67_v6 = vld [vmem:[%s384_s1 + $0x10] sm:$0xff]  ;;  %v21_v8 = vld [vmem:[%s383_s0] sm:$0xff] }
   0x4   :  { %117 = vmatpush.msra.mxu1 %v68_v3  ;;  %148 = vmatpush.msra.mxu2 %v231_v1  ;;  %v22_v9 = vld [vmem:[%s383_s0 + $0x8] sm:$0xf]  ;;  %v23_v10 = vld [vmem:[%s383_s0 + $0x10] sm:$0xff]  ;;  %v24_v11 = vld [vmem:[%s383_s0 + $0x18] sm:$0xf]  ;;  %v26_v12 = vsel %vm25_vm0, %v21_v8, 0.0 }
   0x5   :  { %93 = vmatpush.msra.mxu0 %v225_v5  ;;  %v28_v13 = vsel %vm27_vm1, %v22_v9, 0.0  ;;  %v36_v14 = vsel %vm25_vm0, %v23_v10, 0.0  ;;  %v37_v15 = vsel %vm27_vm1, %v24_v11, 0.0  ;;  %v224_v16 = vld [vmem:[%s384_s1 + $0x28] sm:$0xff]  ;;  %v223_v18 = vld [vmem:[%s384_s1 + $0x20] sm:$0xff]  ;;  %v47_v22 = vsel %vm25_vm0, %v21_v8, -inf }
   0x6   :  { %118 = vmatpush.msra.mxu1 %v67_v6  ;;  %v66_v17 = vld [vmem:[%s384_s1 + $0x8] sm:$0xff]  ;;  %149 = vmatpush.msra.mxu2 %v230_v4  ;;  %v29_v19 = vadd.f32 %v28_v13, %v26_v12  ;;  %v38_v20 = vadd.f32 %v37_v15, %v36_v14  ;;  %v65_v21 = vld [vmem:[%s384_s1] sm:$0xff]  ;;  %v48_v23 = vsel %vm27_vm1, %v22_v9, -inf  ;;  %v56_v25 = vsel %vm25_vm0, %v23_v10, -inf }
   0x7   :  { %94 = vmatpush.msra.mxu0 %v224_v16  ;;  %v49_v24 = vmax.f32 %v47_v22, %v48_v23  ;;  %v57_v26 = vsel %vm27_vm1, %v24_v11, -inf }
   0x8   :  { %119 = vmatpush.msra.mxu1 %v66_v17 }
   0x9   :  { %10 = vsyncpa [#allocation3], 0  ;;  %150 = vmatpush.msra.mxu2 %v229_v7  ;;  %v30_v27 = vrot.slane %v29_v19, 4  ;;  %v39_v28 = vrot.slane %v38_v20, 4  ;;  %95 = vmatpush.msra.mxu0 %v223_v18  ;;  %v58_v29 = vmax.f32 %v56_v25, %v57_v26  ;;  %v50_v30 = vrot.slane %v49_v24, 4  ;;  %v165_v57 = vld [vmem:[%s386_s3 + $0x18] sm:$0xff] }
   0xa   :  { %120 = vmatpush.msra.mxu1 %v65_v21  ;;  %vm76_vm2 = vcmask 1041409   ;;  %185 = vmatpush.msra.mxu3 %v165_v57  ;;  %v164_v58 = vld [vmem:[%s386_s3 + $0x10] sm:$0xff]  ;;  %v163_v59 = vld [vmem:[%s386_s3 + $0x8] sm:$0xff]  ;;  %v162_v60 = vld [vmem:[%s386_s3] sm:$0xff]  ;;  %vm193_vm3 = vcmask 25600   ;;  %s214_s11 = sshll.u32 %s388_s5, 4  ;;  %s215_s11 = int_to_ptr.hbm [resolvable:$true] %s214_s11 }
   0xb   :  { %v31_v31 = vadd.f32 %v30_v27, %v29_v19  ;;  %v40_v32 = vadd.f32 %v39_v28, %v38_v20  ;;  %v59_v33 = vrot.slane %v58_v29, 4  ;;  %v51_v34 = vmax.f32 %v49_v24, %v50_v30  ;;  %v236_v0 = vld [vmem:[%s385_s2] ss:$0 sm:$0xff]  ;;  %s268_s2 = smov [#allocation2]  }
   0xc   :  { %186 = vmatpush.msra.mxu3 %v164_v58  ;;  %v237_v5 = vld [vmem:[%s387_s4] ss:$0 sm:$0xff]  ;;  %s212_s3 = sshll.u32 %s268_s2, 4  ;;  %s213_s3 = int_to_ptr.vmem [resolvable:$true] %s212_s3 }
   0xd   :  { %v32_v35 = vrot.slane %v31_v31, 2  ;;  %v41_v36 = vrot.slane %v40_v32, 2  ;;  %v60_v37 = vmax.f32 %v58_v29, %v59_v33  ;;  %v52_v38 = vrot.slane %v51_v34, 2 }
   0xe   :  { %187 = vmatpush.msra.mxu3 %v163_v59 }
   0xf   :  { %v33_v39 = vadd.f32 %v32_v35, %v31_v31  ;;  %v42_v40 = vadd.f32 %v41_v36, %v40_v32  ;;  %v61_v41 = vrot.slane %v60_v37, 2  ;;  %v53_v42 = vmax.f32 %v51_v34, %v52_v38 }
  0x10   :  { %188 = vmatpush.msra.mxu3 %v162_v60 }
  0x11   :  { %v34_v43 = vrot.slane %v33_v39, 1  ;;  %v43_v44 = vrot.slane %v42_v40, 1  ;;  %v62_v45 = vmax.f32 %v60_v37, %v61_v41  ;;  %v54_v46 = vrot.slane %v53_v42, 1 }
  0x13   :  { %v35_v47 = vadd.f32 %v34_v43, %v33_v39  ;;  %v44_v48 = vadd.f32 %v43_v44, %v42_v40  ;;  %v63_v49 = vrot.slane %v62_v45, 1  ;;  %v55_v50 = vmax.f32 %v53_v42, %v54_v46 }
  0x15   :  { %v132_v51 = vsel %vm76_vm2, %v44_v48, %v35_v47  ;;  %v64_v52 = vmax.f32 %v62_v45, %v63_v49  ;;  %v45_v53 = vmul.f32 0.083333336, %v35_v47  ;;  %v46_v54 = vmul.f32 0.083333336, %v44_v48 }
  0x16   :  { %233 = vmatmul.msk.f32.vlgmr.msra.gmra.mxu2 %vm25_vm0, %v132_v51 }
  0x17   :  { %v77_v55 = vsel %vm76_vm2, %v64_v52, %v55_v50  ;;  %v102_v56 = vsel %vm76_vm2, %v46_v54, %v45_v53 }
  0x18   :  { %227 = vmatmul.msk.f32.vlgmr.msra.gmra.mxu0 %vm25_vm0, %v77_v55  ;;  %228 = vmatmul.msk.f32.vlgmr.msra.gmra.mxu1 %vm25_vm0, %v102_v56 }
  0x95   :  { %v97_v61 = vpop.f32.mrf.mxu0  ;;  %v122_v62 = vpop.f32.mrf.mxu1 }
  0x96   :  { %v123_v63 = vadd.f32 %v122_v62, %v97_v61 }
  0x99   :  { %v152_v1 = vpop.f32.mrf.mxu2 }
  0x9a   :  { %v155_v2 = vadd.f32 %v152_v1, %v123_v63 }
  0x9c   :  { %v160_v3 = vadd.f32 %v236_v0, %v155_v2 }
  0x9e   :  { %v161_v4 = vmax.f32 %v160_v3, 0.0 }
  0xa0   :  { %234 = vmatmul.msk.f32.vlgmr.msra.gmra.mxu3 %vm25_vm0, %v161_v4 }
 0x123   :  { %v190_v6 = vpop.f32.mrf.mxu3 }
 0x124   :  { %v191_v7 = vadd.f32 %v237_v5, %v190_v6 }
 0x126   :  { %v194_v8 = vsel %vm193_vm3, %v191_v7, -inf }
 0x127   :  { %195 = vmax.xlane.f32.xlu0 %v194_v8 }
 0x19a   :  { %v196_v9 = vpop.xlane.xlu0 %195 }
 0x19b   :  { %v197_v10 = vsub.f32 %v191_v7, %v196_v9 }
 0x19d   :  { %v198_v11 = vmul.f32 1.442695, %v197_v10 }
 0x19f   :  { %238 = vpow2.f32 %v198_v11 }
 0x1a5   :  { %v239_v12 = vpop.eup %238 }
 0x1a6   :  { %v200_v13 = vsel %vm193_vm3, %v239_v12, 0.0 }
 0x1a7   :  { %201 = vadd.xlane.f32.xlu0 %v200_v13 }
 0x21a   :  { %v202_v14 = vpop.xlane.xlu0 %201 }
 0x21b   :  { %240 = vlog2.f32 %v202_v14 }
 0x221   :  { %v241_v15 = vpop.eup %240 }
 0x222   :  { %v204_v16 = vmul.f32 0.6931472, %v241_v15 }
 0x224   :  { %v205_v17 = vsub.f32 %v197_v10, %v204_v16 }
 0x226   :  { %206 = vst.msk [vmem:[#allocation2] sm:$0x3] %vm193_vm3, %v205_v17 }
 0x227   :  { %217 = dma.vmem_to_hbm [thread:$0]  %s213_s3, 32, %s215_s11, [#allocation3]  }
 0x228   :  { %266 = dma.done.wait [#allocation3], 32  }
 0x229   :  { %267 = vsyncadd [#allocation3], 4294967264 }
 0x22a   :  { %222 = vsyncpa [#allocation3], 1 }

// kernel: msmesage_forward.4
= control target key start
LH: loop header
LB: loop body
LE: loop exit
PB: predicated region body
PF: predicated region fallthrough
CT: control target
= control target key end

     0   :  { %vm100_vm0 = vcmask 1043456   ;;  %vm93_vm1 = vcmask 195584   ;;  %vm144_vm2 = vcmask 261120   ;;  %vm275_vm3 = vcmask 523264   ;;  %s1159_s3 = inlined_call_operand.vmem [shape: bf16[1,24,32], index: 3, kind: input, shape index: {}]   ;;  %s1160_s0 = inlined_call_operand.vmem [shape: bf16[1,24,24], index: 0, kind: input, shape index: {}]   ;;  %s1161_s6 = inlined_call_operand.vmem [shape: bf16[32,192], index: 6, kind: input, shape index: {}]   ;;  %s1162_s7 = inlined_call_operand.vmem [shape: bf16[192,32], index: 7, kind: input, shape index: {}]   ;;  %s1163_s4 = inlined_call_operand.vmem [shape: bf16[1,24,192], index: 4, kind: input, shape index: {}]   ;;  %s1164_s2 = inlined_call_operand.vmem [shape: f32[1,24,32], index: 2, kind: input, shape index: {}]   ;;  %s1165_s8 = inlined_call_operand.vmem [shape: bf16[2,32,32], index: 8, kind: input, shape index: {}]   ;;  %s1166_s1 = inlined_call_operand.vmem [shape: f32[1,24,1], index: 1, kind: input, shape index: {}]   ;;  %s1167_s9 = inlined_call_operand.vmem [shape: f32[8,32], index: 9, kind: input, shape index: {}]   ;;  %s1168_s5 = inlined_call_operand.vmem [shape: f32[24,24], index: 5, kind: input, shape index: {}]   ;;  %s1169_s10 = inlined_call_operand.vmem [shape: f32[1,24,32], index: 10, kind: output, shape index: {}]  }
   0x1   :  { %v44_v0 = vld [vmem:[%s1159_s3 + $0x8] sm:$0xf]  ;;  %v849_v6 = vld [vmem:[%s1159_s3] sm:$0xff]  ;;  %v747_v9 = vld [vmem:[%s1161_s6 + $0x10] sm:$0xf] }
   0x2   :  { %v89_v1 = vunpack.c.l.b16 %v44_v0  ;;  %v38_v2 = vld [vmem:[%s1160_s0 + $0x8] sm:$0xf]  ;;  %v960_v7 = vld [vmem:[%s1160_s0] sm:$0xff]  ;;  %v853_v10 = vld [vmem:[%s1161_s6 + $0x14] sm:$0xf0] }
   0x3   :  { %v81_v5 = vunpack.c.l.b16 %v38_v2  ;;  %v852_v11 = vld [vmem:[%s1161_s6 + $0x14] sm:$0xf]  ;;  %v748_v12 = vor.u32 %v853_v10, %v747_v9  ;;  %v749_v13 = vld [vmem:[%s1161_s6 + $0x18] sm:$0xf0]  ;;  %v739_v15 = vld [vmem:[%s1161_s6] sm:$0xf] }
   0x4   :  { %v91_v3 = vpack.c.b16 %v89_v1, %v89_v1  ;;  %v752_v14 = vor.u32 %v852_v11, %v749_v13  ;;  %v851_v16 = vld [vmem:[%s1161_s6 + $0x4] sm:$0xf0]  ;;  %v850_v17 = vld [vmem:[%s1161_s6 + $0x4] sm:$0xf]  ;;  %v741_v19 = vld [vmem:[%s1161_s6 + $0x8] sm:$0xf0] }
   0x5   :  { %v962_v8 = vpack.c.b16 %v81_v5, %v81_v5  ;;  %157 = vmatpush.bf16.msra.mxu1 %v748_v12  ;;  %v740_v18 = vor.u32 %v851_v16, %v739_v15  ;;  %v744_v20 = vor.u32 %v850_v17, %v741_v19  ;;  %v861_v21 = vld [vmem:[%s1162_s7 + $0x38] sm:$0xff]  ;;  %v860_v22 = vld [vmem:[%s1162_s7 + $0x30] sm:$0xff]  ;;  %v859_v24 = vld [vmem:[%s1162_s7 + $0x28] sm:$0xff] }
   0x6   :  { %v102_v4 = vsel %vm100_vm0, %v91_v3, 0  ;;  %282 = vmatpush.bf16.msra.mxu3 %v861_v21  ;;  %v858_v25 = vld [vmem:[%s1162_s7 + $0x20] sm:$0xff]  ;;  %v857_v29 = vld [vmem:[%s1162_s7 + $0x18] sm:$0xff]  ;;  %v856_v32 = vld [vmem:[%s1162_s7 + $0x10] sm:$0xff] }
   0x7   :  { %110 = vmatpush.bf16.msra.mxu0 %v102_v4  ;;  %870 = vmatpush.bf16.msra.mxu2 %v102_v4  ;;  %v865_v33 = vld [vmem:[%s1162_s7 + $0x58] sm:$0xff]  ;;  %v855_v34 = vld [vmem:[%s1162_s7 + $0x8] sm:$0xff]  ;;  %v864_v35 = vld [vmem:[%s1162_s7 + $0x50] sm:$0xff] }
   0x8   :  { %v854_v36 = vld [vmem:[%s1162_s7] sm:$0xff]  ;;  %v863_v37 = vld [vmem:[%s1162_s7 + $0x48] sm:$0xff]  ;;  %v1053_v52 = vld [vmem:[%s1163_s4 + $0x10] sm:$0xff] }
   0x9   :  { %158 = vmatpush.bf16.msra.mxu1 %v740_v18  ;;  %v862_v38 = vld [vmem:[%s1162_s7 + $0x40] sm:$0xff]  ;;  %v1040_v41 = vld [vmem:[%s1163_s4 + $0x8] sm:$0xff]  ;;  %v191_v57 = vunpack.c.l.bf16 %v1053_v52  ;;  %v192_v60 = vunpack.c.h.bf16 %v1053_v52 }
   0xa   :  { %283 = vmatpush.bf16.msra.mxu3 %v860_v22  ;;  %v1035_v40 = vld [vmem:[%s1163_s4] sm:$0xff]  ;;  %v189_v43 = vunpack.c.l.bf16 %v1040_v41  ;;  %v190_v50 = vunpack.c.h.bf16 %v1040_v41  ;;  %v40_v10 = vld [vmem:[%s1164_s2 + $0x8] sm:$0xff] }
   0xb   :  { %111 = vmatpush.bf16.msra.mxu0 %v849_v6  ;;  %871 = vmatpush.bf16.msra.mxu2 %v849_v6  ;;  %v187_v42 = vunpack.c.l.bf16 %v1035_v40  ;;  %v188_v48 = vunpack.c.h.bf16 %v1035_v40  ;;  %v39_v5 = vld [vmem:[%s1164_s2] sm:$0xff]  ;;  %v869_v40 = vld [vmem:[%s1165_s8 + $0x18] sm:$0xff] }
   0xd   :  { %335 = vmatpush.bf16.msrb.mxu1 %v748_v12 }
   0xe   :  { %735 = vmatmul.msk.bf16.vlgmr.msra.gmra.mxu0 %vm93_vm1, %v960_v7  ;;  %736 = vmatmul.msk.bf16.vlgmr.msra.gmra.mxu2 %vm93_vm1, %v962_v8 }
   0xf   :  { %175 = vmatpush.bf16.msrb.mxu2 %v752_v14  ;;  %284 = vmatpush.bf16.msra.mxu3 %v859_v24 }
  0x10   :  { %304 = vmatpush.bf16.msrb.mxu0 %v865_v33 }
  0x11   :  { %336 = vmatpush.bf16.msrb.mxu1 %v740_v18  ;;  %v41_v18 = vld [vmem:[%s1164_s2 + $0x10] sm:$0xff] }
  0x13   :  { %176 = vmatpush.bf16.msrb.mxu2 %v744_v20  ;;  %285 = vmatpush.bf16.msra.mxu3 %v858_v25 }
  0x14   :  { %305 = vmatpush.bf16.msrb.mxu0 %v864_v35 }
  0x17   :  { %353 = vmatpush.bf16.msra.mxu2 %v752_v14  ;;  %286 = vmatpush.bf16.msra.mxu3 %v857_v29 }
  0x18   :  { %306 = vmatpush.bf16.msrb.mxu0 %v863_v37 }
  0x1b   :  { %354 = vmatpush.bf16.msra.mxu2 %v744_v20  ;;  %287 = vmatpush.bf16.msra.mxu3 %v856_v32 }
  0x1c   :  { %307 = vmatpush.bf16.msrb.mxu0 %v862_v38 }
  0x1f   :  { %288 = vmatpush.bf16.msra.mxu3 %v855_v34 }
  0x20   :  { %415 = vmatpush.bf16.msra.mxu0 %v865_v33 }
  0x23   :  { %289 = vmatpush.bf16.msra.mxu3 %v854_v36 }
  0x24   :  { %416 = vmatpush.bf16.msra.mxu0 %v864_v35 }
  0x27   :  { %393 = vmatpush.bf16.msrb.mxu3 %v861_v21 }
  0x28   :  { %417 = vmatpush.bf16.msra.mxu0 %v863_v37 }
  0x2b   :  { %394 = vmatpush.bf16.msrb.mxu3 %v860_v22 }
  0x2c   :  { %418 = vmatpush.bf16.msra.mxu0 %v862_v38 }
  0x2f   :  { %395 = vmatpush.bf16.msrb.mxu3 %v859_v24 }
  0x33   :  { %396 = vmatpush.bf16.msrb.mxu3 %v858_v25 }
  0x37   :  { %397 = vmatpush.bf16.msrb.mxu3 %v857_v29 }
  0x3b   :  { %398 = vmatpush.bf16.msrb.mxu3 %v856_v32 }
  0x3f   :  { %399 = vmatpush.bf16.msrb.mxu3 %v855_v34 }
  0x43   :  { %400 = vmatpush.bf16.msrb.mxu3 %v854_v36 }
  0x8b   :  { %v113_v23 = vpop.f32.mrf.mxu0 }
  0x91   :  { %v118_v26 = vpop.f32.mrf.mxu2 }
  0x92   :  { %v123_v31 = vpack.c.bf16 %v118_v26, %v118_v26 }
  0x93   :  { %v115_v27 = vpop.f32.mrf.mxu0 }
  0x94   :  { %v122_v28 = vpack.c.bf16 %v115_v27, %v113_v23 }
  0x96   :  { %753 = vmatmul.msk.bf16.vlgmr.msra.gmra.mxu1 %vm144_vm2, %v122_v28  ;;  %755 = vmatmul.msk.bf16.vlgmr.msrb.gmra.mxu2 %vm144_vm2, %v122_v28 }
  0x97   :  { %532 = vmatpush.bf16.msrb.mxu2 %v869_v40 }
  0x99   :  { %v120_v30 = vpop.f32.mrf.mxu2 }
  0xa6   :  { %754 = vmatmul.msk.bf16.gmra.mxu1 %vm144_vm2, %v123_v31  ;;  %756 = vmatmul.msk.bf16.gmra.mxu2 %vm144_vm2, %v123_v31 }
 0x113   :  { %v160_v39 = vpop.f32.mrf.mxu1 }
 0x114   :  { %v193_v46 = vmul.f32 %v187_v42, %v160_v39 }
 0x119   :  { %v178_v44 = vpop.f32.mrf.mxu2 }
 0x11a   :  { %v194_v53 = vmul.f32 %v188_v48, %v178_v44 }
 0x11b   :  { %v162_v45 = vpop.f32.mrf.mxu1 }
 0x11c   :  { %v195_v47 = vmul.f32 %v189_v43, %v162_v45 }
 0x11e   :  { %v199_v49 = vpack.c.bf16 %v195_v47, %v193_v46 }
 0x120   :  { %290 = vmatmul.bf16.vlgmr.msra.gmra.mxu3 %v199_v49 }
 0x121   :  { %v180_v51 = vpop.f32.mrf.mxu2 }
 0x122   :  { %v196_v54 = vmul.f32 %v190_v50, %v180_v51 }
 0x123   :  { %v165_v55 = vpop.f32.mrf.mxu1 }
 0x124   :  { %v200_v56 = vpack.c.bf16 %v196_v54, %v194_v53  ;;  %v197_v58 = vmul.f32 %v191_v57, %v165_v55 }
 0x126   :  { %805 = vmatmul.msk.bf16.vlgmr.msrb.gmra.mxu0 %vm275_vm3, %v200_v56  ;;  %v201_v62 = vpack.c.bf16 %v197_v58, %v197_v58 }
 0x129   :  { %v183_v59 = vpop.f32.mrf.mxu2 }
 0x12a   :  { %v198_v63 = vmul.f32 %v192_v60, %v183_v59  ;;  %v476_v59 = vld [vmem:[%s1166_s1] sm:$0xff] }
 0x12b   :  { %v167_v61 = vpop.f32.mrf.mxu1 }
 0x12c   :  { %v202_v1 = vpack.c.bf16 %v198_v63, %v198_v63  ;;  %v891_v63 = vmov 0  }
 0x12d   :  { %873 = vset.pattern.permute.xlu2 %v891_v63  ;;  %874 = vset.pattern.permute.xlu0 %v891_v63 }
 0x12e   :  { %481 = vperm.xlu2 %873, %v476_v59  }
 0x130   :  { %295 = vmatmul.bf16.gmra.mxu3 %v201_v62 }
 0x131   :  { %v185_v0 = vpop.f32.mrf.mxu2 }
 0x136   :  { %806 = vmatmul.msk.bf16.gmra.mxu0 %vm275_vm3, %v202_v1 }
 0x1a3   :  { %v291_v2 = vpop.f32.mrf.mxu3  ;;  %v309_v3 = vpop.f32.mrf.mxu0 }
 0x1a4   :  { %v310_v4 = vadd.f32 %v309_v3, %v291_v2  ;;  %v477_v3 = vld [vmem:[%s1166_s1 + $0x8] sm:$0xff] }
 0x1a5   :  { %486 = vperm.xlu2 %873, %v477_v3  }
 0x1a6   :  { %v318_v12 = vadd.f32 %v310_v4, %v39_v5 }
 0x1a8   :  { %v375_v25 = vsel %vm144_vm2, %v318_v12, 0.0 }
 0x1ab   :  { %v293_v6 = vpop.f32.mrf.mxu3  ;;  %v311_v9 = vpop.f32.mrf.mxu0 }
 0x1ac   :  { %v312_v11 = vadd.f32 %v311_v9, %v293_v6 }
 0x1ae   :  { %v319_v13 = vadd.f32 %v312_v11, %v40_v10 }
 0x1b0   :  { %v378_v14 = vsel %vm144_vm2, %v319_v13, 0.0  ;;  %v321_v15 = vpack.c.bf16 %v319_v13, %v318_v12  ;;  %v866_v12 = vld [vmem:[%s1165_s8] sm:$0xff] }
 0x1b1   :  { %379 = vadd.xlane.f32.xlu1 %v378_v14  ;;  %v482_v14 = vpop.permute.xlu2 %481 }
 0x1b2   :  { %807 = vmatmul.msk.bf16.vlgmr.msrb.gmra.mxu1 %vm144_vm2, %v321_v15  ;;  %809 = vmatmul.msk.bf16.vlgmr.msra.gmra.mxu2 %vm144_vm2, %v321_v15 }
 0x1b3   :  { %v296_v16 = vpop.f32.mrf.mxu3  ;;  %v314_v17 = vpop.f32.mrf.mxu0 }
 0x1b4   :  { %v315_v19 = vadd.f32 %v314_v17, %v296_v16 }
 0x1b6   :  { %v320_v20 = vadd.f32 %v315_v19, %v41_v18 }
 0x1b8   :  { %v381_v21 = vsel %vm144_vm2, %v320_v20, 0.0  ;;  %v322_v24 = vpack.c.bf16 %v320_v20, %v320_v20 }
 0x1b9   :  { %382 = vadd.xlane.f32.xlu0 %v381_v21 }
 0x1bb   :  { %v298_v22 = vpop.f32.mrf.mxu3  ;;  %v316_v23 = vpop.f32.mrf.mxu0 }
 0x1c1   :  { %376 = vadd.xlane.f32.xlu0 %v375_v25 }
 0x1c2   :  { %808 = vmatmul.msk.bf16.gmra.mxu1 %vm144_vm2, %v322_v24  ;;  %810 = vmatmul.msk.bf16.gmra.mxu2 %vm144_vm2, %v322_v24 }
 0x1eb   :  { %433 = vxpose.xlu1.c.b16.start [1/2] (short) (narrow) %v960_v7, 32 }
 0x1fb   :  { %434 = vxpose.xlu1.c.b16.end [2/2] (short) (narrow) %v962_v8, 32 }
 0x1ff   :  { %v487_v18 = vpop.permute.xlu2 %486 }
 0x22c   :  { %v383_v44 = vpop.xlane.xlu0 %382 }
 0x22d   :  { %v386_v58 = vmul.f32 %v383_v44, %v315_v19 }
 0x22f   :  { %v338_v26 = vpop.f32.mrf.mxu1 }
 0x230   :  { %v365_v29 = vmul.f32 %v338_v26, %v187_v42 }
 0x234   :  { %v377_v47 = vpop.xlane.xlu0 %376 }
 0x235   :  { %v356_v27 = vpop.f32.mrf.mxu2  ;;  %v384_v49 = vmul.f32 %v377_v47, %v310_v4 }
 0x236   :  { %v366_v33 = vmul.f32 %v356_v27, %v188_v48  ;;  %v380_v48 = vpop.xlane.xlu1 %379 }
 0x237   :  { %v340_v28 = vpop.f32.mrf.mxu1 }
 0x238   :  { %v367_v30 = vmul.f32 %v340_v28, %v189_v43  ;;  %v868_v43 = vld [vmem:[%s1165_s8 + $0x10] sm:$0xff] }
 0x239   :  { %533 = vmatpush.bf16.msrb.mxu2 %v868_v43  ;;  %v878_v43 = vld [vmem:[%s1167_s9 + $0x1] ss:$0 sm:$0xff] }
 0x23a   :  { %v371_v31 = vpack.c.bf16 %v367_v30, %v365_v29 }
 0x23c   :  { %401 = vmatmul.bf16.vlgmr.msrb.gmra.mxu3 %v371_v31 }
 0x23d   :  { %v358_v32 = vpop.f32.mrf.mxu2 }
 0x23e   :  { %v368_v34 = vmul.f32 %v358_v32, %v190_v50  ;;  %v385_v50 = vmul.f32 %v380_v48, %v312_v11  ;;  %v867_v11 = vld [vmem:[%s1165_s8 + $0x8] sm:$0xff]  ;;  %v875_v32 = vld [vmem:[%s1167_s9] ss:$0 sm:$0xff] }
 0x23f   :  { %v343_v35 = vpop.f32.mrf.mxu1  ;;  %568 = vmatpush.bf16.msra.mxu3 %v867_v11 }
 0x240   :  { %v372_v7 = vpack.c.bf16 %v368_v34, %v366_v33  ;;  %v369_v8 = vmul.f32 %v343_v35, %v191_v57 }
 0x242   :  { %811 = vmatmul.msk.bf16.vlgmr.msra.gmra.mxu0 %vm275_vm3, %v372_v7  ;;  %v373_v38 = vpack.c.bf16 %v369_v8, %v369_v8 }
 0x243   :  { %569 = vmatpush.bf16.msra.mxu3 %v866_v12 }
 0x245   :  { %v361_v36 = vpop.f32.mrf.mxu2 }
 0x246   :  { %v370_v39 = vmul.f32 %v361_v36, %v192_v60  ;;  %v478_v60 = vld [vmem:[%s1166_s1 + $0x10] sm:$0xff] }
 0x247   :  { %v345_v37 = vpop.f32.mrf.mxu1  ;;  %491 = vperm.xlu0 %874, %v478_v60  }
 0x248   :  { %v374_v41 = vpack.c.bf16 %v370_v39, %v370_v39  ;;  %v584_v37 = vld [vmem:[%s1168_s5] sm:$0xff]  ;;  %v585_v39 = vld [vmem:[%s1168_s5 + $0x8] sm:$0xff] }
 0x24c   :  { %406 = vmatmul.bf16.gmra.mxu3 %v373_v38 }
 0x24d   :  { %v363_v42 = vpop.f32.mrf.mxu2 }
 0x24e   :  { %v586_v42 = vld [vmem:[%s1168_s5 + $0x10] sm:$0xff] }
 0x252   :  { %812 = vmatmul.msk.bf16.gmra.mxu0 %vm275_vm3, %v374_v41 }
 0x297   :  { %v441_v9 = vpop.trf.xlu1 }
 0x2a7   :  { %v442_v10 = vpop.trf.xlu1 }
 0x2b9   :  { %v492_v25 = vpop.permute.xlu0 %491 }
 0x2bf   :  { %v402_v45 = vpop.f32.mrf.mxu3  ;;  %v420_v46 = vpop.f32.mrf.mxu0 }
 0x2c0   :  { %v403_v51 = vadd.f32 %v402_v45, %v384_v49 }
 0x2c2   :  { %v421_v55 = vadd.f32 %v420_v46, %v403_v51 }
 0x2c7   :  { %v404_v52 = vpop.f32.mrf.mxu3  ;;  %v422_v53 = vpop.f32.mrf.mxu0 }
 0x2c8   :  { %v405_v54 = vadd.f32 %v404_v52, %v385_v50 }
 0x2ca   :  { %v423_v56 = vadd.f32 %v422_v53, %v405_v54 }
 0x2cc   :  { %v429_v57 = vpack.c.bf16 %v423_v56, %v421_v55 }
 0x2ce   :  { %827 = vmatmul.msk.bf16.vlgmr.msrb.gmra.mxu2 %vm144_vm2, %v429_v57 }
 0x2cf   :  { %v407_v61 = vpop.f32.mrf.mxu3  ;;  %v425_v62 = vpop.f32.mrf.mxu0 }
 0x2d0   :  { %v408_v0 = vadd.f32 %v407_v61, %v386_v58 }
 0x2d2   :  { %v426_v1 = vadd.f32 %v425_v62, %v408_v0 }
 0x2d4   :  { %v430_v2 = vpack.c.bf16 %v426_v1, %v426_v1 }
 0x2d6   :  { %v456_v4 = vsel %vm100_vm0, %v430_v2, 0 }
 0x2d7   :  { %v409_v5 = vpop.f32.mrf.mxu3  ;;  %v427_v6 = vpop.f32.mrf.mxu0  ;;  %464 = vmatpush.bf16.msra.mxu1 %v456_v4  ;;  %v876_v4 = vld [vmem:[%s1167_s9 + $0x2] ss:$0 sm:$0xff] }
 0x2db   :  { %465 = vmatpush.bf16.msra.mxu1 %v429_v57 }
 0x2de   :  { %813 = vmatmul.msk.bf16.vlgmr.msra.gmra.mxu1 %vm93_vm1, %v441_v9  ;;  %828 = vmatmul.msk.bf16.gmra.mxu2 %vm144_vm2, %v430_v2  ;;  %v877_v9 = vld [vmem:[%s1167_s9 + $0x3] ss:$0 sm:$0xff] }
 0x2ee   :  { %814 = vmatmul.msk.bf16.gmra.mxu1 %vm93_vm1, %v442_v10 }
 0x351   :  { %v535_v13 = vpop.f32.mrf.mxu2 }
 0x359   :  { %v537_v15 = vpop.f32.mrf.mxu2 }
 0x35b   :  { %v467_v16 = vpop.f32.mrf.mxu1 }
 0x35c   :  { %v494_v20 = vmul.f32 %v482_v14, %v467_v16 }
 0x361   :  { %v540_v17 = vpop.f32.mrf.mxu2 }
 0x363   :  { %v469_v19 = vpop.f32.mrf.mxu1 }
 0x364   :  { %v495_v21 = vmul.f32 %v487_v18, %v469_v19 }
 0x366   :  { %v497_v22 = vpack.c.bf16 %v495_v21, %v494_v20 }
 0x368   :  { %837 = vmatmul.msk.bf16.vlgmr.msra.gmra.mxu3 %vm144_vm2, %v497_v22 }
 0x369   :  { %v542_v23 = vpop.f32.mrf.mxu2 }
 0x36b   :  { %v472_v24 = vpop.f32.mrf.mxu1 }
 0x36c   :  { %v496_v26 = vmul.f32 %v492_v25, %v472_v24 }
 0x36e   :  { %v498_v28 = vpack.c.bf16 %v496_v26, %v496_v26 }
 0x373   :  { %v474_v27 = vpop.f32.mrf.mxu1 }
 0x378   :  { %838 = vmatmul.msk.bf16.gmra.mxu3 %vm144_vm2, %v498_v28 }
 0x3eb   :  { %v571_v29 = vpop.f32.mrf.mxu3 }
 0x3ec   :  { %v572_v35 = vadd.f32 %v571_v29, %v535_v13 }
 0x3ee   :  { %v581_v36 = vadd.f32 %v875_v32, %v572_v35 }
 0x3f3   :  { %v573_v30 = vpop.f32.mrf.mxu3 }
 0x3f4   :  { %v574_v33 = vadd.f32 %v573_v30, %v537_v15 }
 0x3f6   :  { %v582_v8 = vadd.f32 %v875_v32, %v574_v33 }
 0x3fb   :  { %v576_v31 = vpop.f32.mrf.mxu3 }
 0x3fc   :  { %v577_v34 = vadd.f32 %v576_v31, %v540_v17 }
 0x3fe   :  { %v583_v7 = vadd.f32 %v875_v32, %v577_v34 }
 0x400   :  { %612 = vmatpush.msrb.mxu0 %v583_v7 }
 0x402   :  { %613 = vmatpush.msrb.mxu0 %v582_v8 }
 0x403   :  { %v578_v38 = vpop.f32.mrf.mxu3 }
 0x404   :  { %614 = vmatpush.msrb.mxu0 %v581_v36 }
 0x405   :  { %839 = vmatmul.msk.f32.vlgmr.msrb.gmra.mxu0 %vm93_vm1, %v584_v37 }
 0x40d   :  { %840 = vmatmul.msk.f32.gmra.mxu0 %vm93_vm1, %v585_v39 }
 0x415   :  { %841 = vmatmul.msk.f32.gmra.mxu0 %vm93_vm1, %v586_v42 }
 0x482   :  { %v616_v41 = vpop.f32.mrf.mxu0 }
 0x483   :  { %v626_v46 = vmul.f32 %v878_v43, %v616_v41 }
 0x485   :  { %v629_v50 = vsub.f32 %v581_v36, %v626_v46 }
 0x487   :  { %v632_v53 = vmul.f32 %v629_v50, %v629_v50 }
 0x48a   :  { %v619_v40 = vpop.f32.mrf.mxu0 }
 0x48b   :  { %v627_v44 = vmul.f32 %v878_v43, %v619_v40 }
 0x48d   :  { %v630_v48 = vsub.f32 %v582_v8, %v627_v44 }
 0x48f   :  { %v633_v52 = vmul.f32 %v630_v48, %v630_v48 }
 0x492   :  { %v622_v45 = vpop.f32.mrf.mxu0 }
 0x493   :  { %v628_v47 = vmul.f32 %v878_v43, %v622_v45 }
 0x495   :  { %v1133_v49 = vsub.f32 %v583_v7, %v628_v47 }
 0x497   :  { %v634_v51 = vmul.f32 %v1133_v49, %v1133_v49 }
 0x499   :  { %648 = vmatpush.msrb.mxu1 %v634_v51 }
 0x49b   :  { %649 = vmatpush.msrb.mxu1 %v633_v52 }
 0x49d   :  { %650 = vmatpush.msrb.mxu1 %v632_v53 }
 0x49e   :  { %842 = vmatmul.msk.f32.vlgmr.msrb.gmra.mxu1 %vm93_vm1, %v584_v37 }
 0x4a6   :  { %843 = vmatmul.msk.f32.gmra.mxu1 %vm93_vm1, %v585_v39 }
 0x4ae   :  { %844 = vmatmul.msk.f32.gmra.mxu1 %vm93_vm1, %v586_v42 }
 0x51b   :  { %v652_v54 = vpop.f32.mrf.mxu1 }
 0x51c   :  { %v653_v55 = vadd.f32 1e-05, %v652_v54 }
 0x51e   :  { %879 = vrsqrt.f32 %v653_v55  ;;  %vm667_vm5 = vweird.f32 %v653_v55 }
 0x523   :  { %v655_v56 = vpop.f32.mrf.mxu1 }
 0x524   :  { %v880_v57 = vpop.eup %879  ;;  %v656_v58 = vadd.f32 1e-05, %v655_v56 }
 0x525   :  { %v662_v59 = vmul.f32 %v880_v57, %v653_v55  ;;  %vm668_vm4 = vweird.f32 %v880_v57 }
 0x526   :  { %881 = vrsqrt.f32 %v656_v58  ;;  %vm669_vm6 = vmor %vm667_vm5, %vm668_vm4  ;;  %vm677_vm8 = vweird.f32 %v656_v58 }
 0x527   :  { %v663_v60 = vmul.f32 %v880_v57, %v662_v59 }
 0x529   :  { %v664_v61 = vmul.f32 0.5, %v663_v60 }
 0x52b   :  { %v665_v62 = vsub.f32 1.5, %v664_v61  ;;  %v658_v63 = vpop.f32.mrf.mxu1 }
 0x52c   :  { %v882_v0 = vpop.eup %881  ;;  %v659_v1 = vadd.f32 1e-05, %v658_v63 }
 0x52d   :  { %v666_v2 = vmul.f32 %v880_v57, %v665_v62  ;;  %v672_v3 = vmul.f32 %v882_v0, %v656_v58  ;;  %vm678_vm7 = vweird.f32 %v882_v0 }
 0x52e   :  { %883 = vrsqrt.f32 %v659_v1  ;;  %vm679_vm9 = vmor %vm677_vm8, %vm678_vm7  ;;  %vm687_vm11 = vweird.f32 %v659_v1 }
 0x52f   :  { %v670_v5 = vsel %vm669_vm6, %v880_v57, %v666_v2  ;;  %v673_v6 = vmul.f32 %v882_v0, %v672_v3 }
 0x530   :  { %v691_v10 = vmul.f32 %v670_v5, %v629_v50 }
 0x531   :  { %v674_v11 = vmul.f32 0.5, %v673_v6 }
 0x532   :  { %v695_v12 = vmul.f32 %v876_v4, %v691_v10 }
 0x533   :  { %v675_v13 = vsub.f32 1.5, %v674_v11 }
 0x534   :  { %v884_v14 = vpop.eup %883  ;;  %v699_v15 = vadd.f32 %v877_v9, %v695_v12 }
 0x535   :  { %v676_v16 = vmul.f32 %v882_v0, %v675_v13  ;;  %v682_v17 = vmul.f32 %v884_v14, %v659_v1  ;;  %vm688_vm10 = vweird.f32 %v884_v14 }
 0x536   :  { %v705_v18 = vmin.f32 %v699_v15, 0.0  ;;  %vm689_vm12 = vmor %vm687_vm11, %vm688_vm10  ;;  %vm702_vm13 = vcmp.gt.f32.partialorder %v699_v15, 0.0 }
 0x537   :  { %v680_v19 = vsel %vm679_vm9, %v882_v0, %v676_v16  ;;  %v683_v20 = vmul.f32 %v884_v14, %v682_v17 }
 0x538   :  { %v708_v21 = vmul.f32 1.442695, %v705_v18  ;;  %v692_v22 = vmul.f32 %v680_v19, %v630_v48 }
 0x539   :  { %v684_v23 = vmul.f32 0.5, %v683_v20 }
 0x53a   :  { %885 = vpow2.f32 %v708_v21  ;;  %v696_v24 = vmul.f32 %v876_v4, %v692_v22 }
 0x53b   :  { %v685_v25 = vsub.f32 1.5, %v684_v23 }
 0x53c   :  { %v700_v26 = vadd.f32 %v877_v9, %v696_v24 }
 0x53d   :  { %v686_v27 = vmul.f32 %v884_v14, %v685_v25 }
 0x53e   :  { %v706_v28 = vmin.f32 %v700_v26, 0.0  ;;  %vm703_vm14 = vcmp.gt.f32.partialorder %v700_v26, 0.0 }
 0x53f   :  { %v690_v29 = vsel %vm689_vm12, %v884_v14, %v686_v27 }
 0x540   :  { %v886_v30 = vpop.eup %885  ;;  %v710_v31 = vmul.f32 1.442695, %v706_v28  ;;  %v693_v32 = vmul.f32 %v690_v29, %v1133_v49 }
 0x541   :  { %v845_v33 = vadd.f32 -1.0, %v886_v30 }
 0x542   :  { %887 = vpow2.f32 %v710_v31  ;;  %v697_v34 = vmul.f32 %v876_v4, %v693_v32 }
 0x543   :  { %v717_v35 = vsel %vm702_vm13, %v699_v15, %v845_v33 }
 0x544   :  { %720 = vst.msk [vmem:[%s1169_s10] sm:$0xff] %vm144_vm2, %v717_v35  ;;  %v701_v7 = vadd.f32 %v877_v9, %v697_v34 }
 0x546   :  { %v707_v8 = vmin.f32 %v701_v7, 0.0  ;;  %vm704_vm15 = vcmp.gt.f32.partialorder %v701_v7, 0.0 }
 0x548   :  { %v888_v36 = vpop.eup %887  ;;  %v712_v37 = vmul.f32 1.442695, %v707_v8 }
 0x549   :  { %v846_v38 = vadd.f32 -1.0, %v888_v36 }
 0x54a   :  { %889 = vpow2.f32 %v712_v37 }
 0x54b   :  { %v718_v39 = vsel %vm703_vm14, %v700_v26, %v846_v38 }
 0x54c   :  { %721 = vst.msk [vmem:[%s1169_s10 + $0x8] sm:$0xff] %vm144_vm2, %v718_v39 }
 0x550   :  { %v890_v42 = vpop.eup %889 }
 0x551   :  { %v847_v41 = vadd.f32 -1.0, %v890_v42 }
 0x553   :  { %v719_v40 = vsel %vm704_vm15, %v701_v7, %v847_v41 }
 0x554   :  { %722 = vst.msk [vmem:[%s1169_s10 + $0x10] sm:$0xff] %vm144_vm2, %v719_v40 }

</bundles_post_ra>
